<compile_context>
chip_gen: v6e
topology: v6e:2x2x1
jax: 0.10.0
libtpu: 0.0.40
codegen_flags: <defaults>
</compile_context>

<pallas_src>
import math

import jax
import jax.numpy as jnp
from jax.experimental import pallas as pl
from jax.experimental.pallas import tpu as pltpu

_BLOCK_BYTES = 6 * 1024 * 1024          # ~6 MiB output blocks
_VMEM_LIMIT = 32 * 1024 * 1024          # explicit scoped-VMEM limit (all chips)


# ------------------------------ kernel bodies -------------------------------

def _sep_kernel(ytab_ref, xtab_ref, o_ref):
    """Separable path: o[c, h, w] = ytab[c, h, 0] + xtab[c, 0, w].

    ytab is zero in the x-half channels and xtab zero in the y-half channels,
    so the broadcast add selects the right table per channel.  No
    transcendentals in the hot loop.
    """
    o_ref[...] = (ytab_ref[...] + xtab_ref[...]).astype(o_ref.dtype)


def _flat_kernel(yemb_ref, xemb_ref, consts_ref, o_ref):
    """Flat path: o[c, l] = sin(y[l]*wy[c] + x[l]*wx[c] + phase[c]).

    yemb_ref, xemb_ref : (1, tile)  per-position y / x embed values
    consts_ref         : (C, 3)     fused [wy, wx, phase] per-channel constants
    o_ref              : (C, tile)
    """
    wy = consts_ref[:, 0:1]            # (C, 1)  1/dim_t gated to the y half
    wx = consts_ref[:, 1:2]            # (C, 1)  1/dim_t gated to the x half
    ph = consts_ref[:, 2:3]            # (C, 1)  0 (even ch) or pi/2 (odd ch)
    arg = yemb_ref[...] * wy + xemb_ref[...] * wx + ph
    # cos(a) == sin(a + pi/2): a single transcendental pass, no select.
    o_ref[...] = jnp.sin(arg).astype(o_ref.dtype)


# ------------------------------ host helpers --------------------------------

def _per_channel_consts(num_pos_feats, temperature):
    d = jnp.arange(num_pos_feats, dtype=jnp.float32)
    dim_t = jnp.asarray(temperature, jnp.float32) ** (
        2.0 * jnp.floor(d / 2.0) / float(num_pos_feats))
    inv_dim_t = 1.0 / dim_t                                          # (npf,)
    phase = jnp.where(d % 2 == 0, 0.0, math.pi / 2).astype(jnp.float32)
    return inv_dim_t, phase


def _axis_embed(n, normalize, scale):
    """cumsum of an all-ones mask along one axis == index + 1 (opt. normalized)."""
    v = jnp.arange(1, n + 1, dtype=jnp.float32)
    if normalize:
        eps = 1e-6
        # last cumsum value along the axis is n (all-ones mask)
        v = (v - 0.5) / (float(n) + eps) * scale
    return v


def _flat_tile(hw, c, out_bytes):
    """Lane tile for the flat (C, hw) path."""
    max_tile = max(128, _BLOCK_BYTES // (c * out_bytes))
    max_tile = (max_tile // 128) * 128
    if hw <= 128:
        return hw                        # single tiny full-dim block
    if hw <= max_tile:
        if hw % 256 == 0:
            return hw // 2               # 2 lane-dense tiles -> both v7x TCs busy
        return hw                        # one full-dim block, no masked remainder
    return max(128, min(max_tile, hw))   # lane-dense multiple-of-128 tiles


def _h_tile(h, c, w, out_bytes):
    """Row tile for the separable (C, H, W) path.

    Budgets the output block plus the lane-padded (C, TH, 1) y-table block
    (its 1-wide last dim occupies a full 128-lane tile in VMEM).
    """
    per_row = c * (w * out_bytes + 128 * 4)
    max_th = max(8, (_BLOCK_BYTES // per_row) // 8 * 8)
    if h <= 8:
        return h
    if h <= max_th:
        if h % 16 == 0:
            return h // 2                # >= 2 grid steps for v7x's two TCs
        return h                         # single full-dim block
    return min(max_th, h)


# --------------------------------- wrapper ----------------------------------

def position_embedding_sine(x, num_pos_feats=64, temperature=10000,
                            normalize=False, scale=None, dtype=jnp.float32):
    """Pallas forward of PositionEmbeddingSine.  `x` is only used for its shape.

    Returns (bs, 2*num_pos_feats, H, W).  All batch elements are identical, so
    a single (C, H, W) slab is computed and the batch axis is a lazy broadcast
    (it only materialises if the consumer forces it).
    """
    if scale is not None and normalize is False:
        raise ValueError('normalize should be True if scale is passed')
    if scale is None:
        scale = 2 * math.pi

    bs, _, h, w = x.shape
    C = 2 * num_pos_feats
    out_bytes = jnp.dtype(dtype).itemsize

    inv_dim_t, phase = _per_channel_consts(num_pos_feats, temperature)
    yv = _axis_embed(h, normalize, scale)            # (h,)
    xv = _axis_embed(w, normalize, scale)            # (w,)

    cparams = pltpu.CompilerParams(
        dimension_semantics=("parallel",),
        vmem_limit_bytes=_VMEM_LIMIT)

    if w >= 128:
        # ---- separable path: hoist all sin/cos into tiny per-row/col tables --
        zeros_h = jnp.zeros((num_pos_feats, h), jnp.float32)
        zeros_w = jnp.zeros((num_pos_feats, w), jnp.float32)
        ytab = jnp.concatenate(
            [jnp.sin(yv[None, :] * inv_dim_t[:, None] + phase[:, None]),
             zeros_h], axis=0).reshape(C, h, 1)       # y half active
        xtab = jnp.concatenate(
            [zeros_w,
             jnp.sin(xv[None, :] * inv_dim_t[:, None] + phase[:, None])],
            axis=0).reshape(C, 1, w)                  # x half active

        th = _h_tile(h, C, w, out_bytes)
        grid = (pl.cdiv(h, th),)
        pos_chw = pl.pallas_call(
            _sep_kernel,
            out_shape=jax.ShapeDtypeStruct((C, h, w), dtype),
            grid=grid,
            in_specs=[
                pl.BlockSpec((C, th, 1), lambda i: (0, i, 0)),   # ytab
                pl.BlockSpec((C, 1, w), lambda i: (0, 0, 0)),    # xtab
            ],
            out_specs=pl.BlockSpec((C, th, w), lambda i: (0, i, 0)),
            compiler_params=cparams,
        )(ytab, xtab)
    else:
        # ---- flat path: lanes = H*W (lane-dense stores), one in-kernel sin ---
        hw = h * w
        zeros = jnp.zeros((num_pos_feats,), jnp.float32)
        consts = jnp.stack(
            [jnp.concatenate([inv_dim_t, zeros]),     # wy : y-half active
             jnp.concatenate([zeros, inv_dim_t]),     # wx : x-half active
             jnp.concatenate([phase, phase])],        # phase (even/odd)
            axis=1)                                   # (C, 3)
        y_embed = jnp.broadcast_to(yv[:, None], (h, w)).reshape(1, hw)
        x_embed = jnp.broadcast_to(xv[None, :], (h, w)).reshape(1, hw)

        tile = _flat_tile(hw, C, out_bytes)
        grid = (pl.cdiv(hw, tile),)
        pos_chw = pl.pallas_call(
            _flat_kernel,
            out_shape=jax.ShapeDtypeStruct((C, hw), dtype),
            grid=grid,
            in_specs=[
                pl.BlockSpec((1, tile), lambda g: (0, g)),   # y_embed
                pl.BlockSpec((1, tile), lambda g: (0, g)),   # x_embed
                pl.BlockSpec((C, 3), lambda g: (0, 0)),      # fused consts
            ],
            out_specs=pl.BlockSpec((C, tile), lambda g: (0, g)),
            compiler_params=cparams,
        )(y_embed, x_embed, consts)
        pos_chw = pos_chw.reshape(C, h, w)            # metadata-only reshape

    # TODO(synk): per-sample padding masks (NestedTensor) are not supported; the
    # module hard-codes an all-ones mask, so every batch element is identical.
    return jnp.broadcast_to(pos_chw[None], (bs, C, h, w))


# ------------------------------- verification -------------------------------

def _reference(x, num_pos_feats=64, temperature=10000, normalize=False,
               scale=None):
    """Pure-JAX transcription of the PyTorch forward (for verification)."""
    if scale is None:
        scale = 2 * math.pi
    bs, _, h, w = x.shape
    not_mask = jnp.ones((bs, h, w), jnp.float32)
    y_embed = jnp.cumsum(not_mask, axis=1)
    x_embed = jnp.cumsum(not_mask, axis=2)
    if normalize:
        eps = 1e-6
        y_embed = (y_embed - 0.5) / (y_embed[:, -1:, :] + eps) * scale
        x_embed = (x_embed - 0.5) / (x_embed[:, :, -1:] + eps) * scale
    dim_t = jnp.arange(num_pos_feats, dtype=jnp.float32)
    dim_t = temperature ** (2 * jnp.floor(dim_t / 2) / num_pos_feats)
    pos_x = x_embed[:, :, :, None] / dim_t
    pos_y = y_embed[:, :, :, None] / dim_t
    pos_x = jnp.stack((jnp.sin(pos_x[:, :, :, 0::2]),
                       jnp.cos(pos_x[:, :, :, 1::2])), axis=4).reshape(bs, h, w, -1)
    pos_y = jnp.stack((jnp.sin(pos_y[:, :, :, 0::2]),
                       jnp.cos(pos_y[:, :, :, 1::2])), axis=4).reshape(bs, h, w, -1)
    pos = jnp.concatenate((pos_y, pos_x), axis=3).transpose(0, 3, 1, 2)
    return pos


if __name__ == "__main__":
    key = jax.random.PRNGKey(0)
    k1, k2 = jax.random.split(key)
    # Small NCHW inputs consistent with the module's forward (only shape used).
    x_small = jax.random.normal(k1, (2, 4, 16, 16), dtype=jnp.float32)    # flat path
    x_wide = jax.random.normal(k2, (1, 4, 16, 128), dtype=jnp.float32)    # separable path

    for x in (x_small, x_wide):
        bs, _, h, w = x.shape
        for normalize in (False, True):
            pos = position_embedding_sine(x, num_pos_feats=64, temperature=10000,
                                          normalize=normalize)
            pos = jax.block_until_ready(pos)
            ref = _reference(x, num_pos_feats=64, temperature=10000,
                             normalize=normalize)
            assert pos.shape == (bs, 128, h, w), pos.shape
            err = float(jnp.max(jnp.abs(pos - ref)))
            assert err < 2e-4, (x.shape, normalize, err)

    print("KERNEL_OK")
</pallas_src>

<mosaic_0001>
module attributes {stable_mosaic.version = 11 : i64} {
  func.func @_flat_kernel(%arg0: i32, %arg1: memref<1x128xf32, #tpu.memory_space<vmem>>, %arg2: memref<1x128xf32, #tpu.memory_space<vmem>>, %arg3: memref<128x3xf32, #tpu.memory_space<vmem>>, %arg4: memref<128x128xf32, #tpu.memory_space<vmem>>) attributes {dimension_semantics = [#tpu.dimension_semantics<parallel>], iteration_bounds = array<i64: 2>, scalar_prefetch = 0 : i64, scratch_operands = 0 : i64, tpu.core_type = #tpu.core_type<tc>, window_params = [{transform_indices = @transform_0, window_bounds = array<i64: 1, 128>}, {transform_indices = @transform_1, window_bounds = array<i64: 1, 128>}, {pipeline_mode = #tpu.pipeline_mode<synchronous>, transform_indices = @transform_2, window_bounds = array<i64: 128, 3>}, {transform_indices = @transform_3, window_bounds = array<i64: 128, 128>}]} {
    %c0 = arith.constant 0 : index
    %c0_0 = arith.constant 0 : index
    %0 = vector.load %arg3[%c0, %c0_0] : memref<128x3xf32, #tpu.memory_space<vmem>>, vector<128x1xf32>
    %c0_1 = arith.constant 0 : index
    %c1 = arith.constant 1 : index
    %1 = vector.load %arg3[%c0_1, %c1] : memref<128x3xf32, #tpu.memory_space<vmem>>, vector<128x1xf32>
    %c0_2 = arith.constant 0 : index
    %c2 = arith.constant 2 : index
    %2 = vector.load %arg3[%c0_2, %c2] : memref<128x3xf32, #tpu.memory_space<vmem>>, vector<128x1xf32>
    %c0_3 = arith.constant 0 : index
    %c0_4 = arith.constant 0 : index
    %3 = vector.load %arg1[%c0_3, %c0_4] : memref<1x128xf32, #tpu.memory_space<vmem>>, vector<1x128xf32>
    %4 = vector.broadcast %3 : vector<1x128xf32> to vector<128x128xf32>
    %5 = vector.broadcast %0 : vector<128x1xf32> to vector<128x128xf32>
    %6 = arith.mulf %4, %5 : vector<128x128xf32>
    %c0_5 = arith.constant 0 : index
    %c0_6 = arith.constant 0 : index
    %7 = vector.load %arg2[%c0_5, %c0_6] : memref<1x128xf32, #tpu.memory_space<vmem>>, vector<1x128xf32>
    %8 = vector.broadcast %7 : vector<1x128xf32> to vector<128x128xf32>
    %9 = vector.broadcast %1 : vector<128x1xf32> to vector<128x128xf32>
    %10 = arith.mulf %8, %9 : vector<128x128xf32>
    %11 = arith.addf %6, %10 : vector<128x128xf32>
    %12 = vector.broadcast %2 : vector<128x1xf32> to vector<128x128xf32>
    %13 = arith.addf %11, %12 : vector<128x128xf32>
    %14 = math.sin %13 : vector<128x128xf32>
    %c0_7 = arith.constant 0 : index
    %c0_8 = arith.constant 0 : index
    %15 = vector.load %arg4[%c0_7, %c0_8] : memref<128x128xf32, #tpu.memory_space<vmem>>, vector<128x128xf32>
    tpu.vector_store %arg4[%c0_7, %c0_8], %14 {strides = array<i32>} : memref<128x128xf32, #tpu.memory_space<vmem>>, vector<128x128xf32>,
    return
  }
  func.func @transform_0(%arg0: i32) -> (i32, i32) {
    %c0_i32 = arith.constant 0 : i32
    %c0_i32_0 = arith.constant 0 : i32
    return %c0_i32, %arg0 : i32, i32
  }
  func.func @transform_1(%arg0: i32) -> (i32, i32) {
    %c0_i32 = arith.constant 0 : i32
    %c0_i32_0 = arith.constant 0 : i32
    return %c0_i32, %arg0 : i32, i32
  }
  func.func @transform_2(%arg0: i32) -> (i32, i32) {
    %c0_i32 = arith.constant 0 : i32
    %c0_i32_0 = arith.constant 0 : i32
    %c0_i32_1 = arith.constant 0 : i32
    return %c0_i32, %c0_i32_0 : i32, i32
  }
  func.func @transform_3(%arg0: i32) -> (i32, i32) {
    %c0_i32 = arith.constant 0 : i32
    %c0_i32_0 = arith.constant 0 : i32
    return %c0_i32, %arg0 : i32, i32
  }
}

</mosaic_0001>

<bundles_post_ra>
// kernel: tpu_custom_call.1
= control target key start
LH: loop header
LB: loop body
LE: loop exit
PB: predicated region body
PF: predicated region fallthrough
CT: control target
= control target key end

     0   :  { %8 = vsyncpa [#allocation3], 0  ;;  %s4018_s0 = inlined_call_operand.vmem [shape: f32[1,256], index: 0, kind: input, shape index: {}]   ;;  %s4019_s1 = inlined_call_operand.vmem [shape: f32[1,256], index: 1, kind: input, shape index: {}]   ;;  %s4020_s2 = inlined_call_operand.vmem [shape: f32[128,3], index: 2, kind: input, shape index: {}]   ;;  %s4021_s3 = inlined_call_operand.hbm [shape: f32[128,256], index: 3, kind: output, shape index: {}]  }
   0x1   :  { %10 = vsyncpa [#allocation3 + $0x1], 0  ;;  %s2595_s12 = smov 0   ;;  %s2597_s13 = smov 0  }
   0x2   :  { %s2599_s14 = smov 0   ;;  %s2601_s15 = smov 0  }
   0x3 LB: > { %s2616_s16 = sadd.s32 4294967295, %s2560_s15   ;;  %s2240_s17 = sadd.s32 4294967294, %s2560_s15   ;;  %s2560_s15 = sphi %s2601_s15, %s4066_s15   ;;  %s2556_s14 = sphi %s2599_s14, %s4065_s14   ;;  %s2552_s13 = sphi %s2597_s13, %s4064_s13   ;;  %s2548_s12 = sphi %s2595_s12, %s4063_s12  }
   0x4   : > { %s2620_s18 = sadd.s32 1, %s2560_s15   ;;  %s96_s19 = sadd.s32 1, %s2556_s14 }
   0x5   : > { %s93_s20 = ssub.s32 %s2560_s15, %s2620_s18  ;;  %p106_p0 = scmp.ne.s32.totalorder %s2556_s14, %s2552_s13 }
   0x6   : > { %p94_p1 = scmp.eq.s32.totalorder %s93_s20, 0  ;;  %p107_p2 = scmp.eq.s32.totalorder %s2616_s16, 1 }
   0x7   : > { %p112_p3 = scmp.ne.s32.totalorder %s2552_s13, %s2548_s12  ;;  %p113_p4 = scmp.eq.s32.totalorder %s2240_s17, 1 }
   0x8   : > { %s2631_s21 = scalar_select %p94_p1, %s2556_s14, %s96_s19  }
   0x9   : > { %p2633_p5 = por %p107_p2, %p106_p0  ;;  %p2637_p6 = por %p113_p4, %p112_p3 }
   0xa   : > { %p2243_p7 = scmp.ge.s32.totalorder %s2560_s15, 1  ;;  %p146_p8 = scmp.lt.s32.totalorder %s2560_s15, 3 }
   0xc   : > { %p147_p9 = pnand %p2243_p7, %p146_p8 }
   0xd   : > { %p171_p10 = scmp.lt.s32.totalorder (!%p147_p9), %s2616_s16, 1  ;;  %s168_s27 = sand.u32 (!%p147_p9), 1, %s2552_s13  }
   0xe   : > { %150 = sbr.rel (%p147_p9) target bundleno = 665 (0x299), region = 32  ;;  %s2244_s28 = sshll.u32 (!%p147_p9), %s168_s27, 7 }
   0xf   : > { %s3073_s29 = scalar_lea.vmem (!%p147_p9), [#allocation2], %s2244_s28  ;;  %s2312_s30 = sshll.u32 (!%p147_p9), %s2616_s16, 7 }
  0x10   : > { %s2172_s4 = sshll.u32 (!%p147_p9), %s3073_s29, 4  ;;  %s3970_s7 = scalar_lea.hbm (!%p147_p9), %s4021_s3, %s2312_s30  ;;  %s3972_s4 = int_to_ptr.vmem [resolvable:$true] %s2172_s4 }
  0x11   : > { %s2500_s8 = scalar_lea.vmem (!%p147_p9), %s3972_s4, 2048  ;;  %s2571_s9 = smov (!%p147_p9), [#allocation2]  }
  0x12   : > { %p2501_p11 = scmp.ne.s32.totalorder (!%p147_p9), %s3972_s4, %s2500_s8  ;;  %s2504_s10 = sshll.u32 (!%p147_p9), %s2571_s9, 4  ;;  %s2505_s10 = int_to_ptr.vmem [resolvable:$false] %s2504_s10 }
  0x13   : > { %v179_v0 = vld [vmem:[%s4020_s2 + $0x10] sm:$0xff]  ;;  %v177_v1 = vld [vmem:[%s4020_s2] sm:$0xff]  ;;  %v2562_v2 = vmov 0   ;;  %v180_v3 = vld [vmem:[%s4020_s2 + $0x18] sm:$0xff]  ;;  %v2563_v17 = vmov 1   ;;  %v2564_v18 = vmov 2   ;;  %p2507_p0 = scmp.lt.s32.totalorder %s3972_s4, %s2505_s10 }
  0x14   : > { %2431 = vset.pattern.permute.xlu1 %v2562_v2  ;;  %2430 = vset.pattern.permute.xlu0 %v2562_v2  ;;  %v178_v4 = vld [vmem:[%s4020_s2 + $0x8] sm:$0xff]  ;;  %v181_v6 = vld [vmem:[%s4020_s2 + $0x20] sm:$0xff]  ;;  %v184_v7 = vld [vmem:[%s4020_s2 + $0x38] sm:$0xff]  ;;  %s2693_s11 = scalar_select %p171_p10, %s2616_s16, 1 }
  0x15   : > { %212 = vperm.xlu1 %2431, %v179_v0   ;;  %202 = vperm.xlu0 %2430, %v177_v1   ;;  %v182_v5 = vld [vmem:[%s4020_s2 + $0x28] sm:$0xff]  ;;  %v183_v8 = vld [vmem:[%s4020_s2 + $0x30] sm:$0xff]  ;;  %v185_v10 = vld [vmem:[%s4020_s2 + $0x40] sm:$0xff]  ;;  %s3978_s16 = scalar_lea.sflag [#allocation3], %s168_s27  ;;  %p2502_p12 = pnand %p2501_p11, %p2633_p5 }
  0x16   : > { %v186_v9 = vld [vmem:[%s4020_s2 + $0x48] sm:$0xff]  ;;  %v188_v11 = vld [vmem:[%s4020_s2 + $0x58] sm:$0xff]  ;;  %v187_v12 = vld [vmem:[%s4020_s2 + $0x50] sm:$0xff]  ;;  %s173_s20 = scalar_lea.vmem %s4018_s0, %s2693_s11  ;;  %s176_s26 = scalar_lea.vmem %s4019_s1, %s2693_s11 }
  0x17   : > { %v190_v13 = vld [vmem:[%s4020_s2 + $0x68] sm:$0xff]  ;;  %v189_v14 = vld [vmem:[%s4020_s2 + $0x60] sm:$0xff]  ;;  %v192_v15 = vld [vmem:[%s4020_s2 + $0x78] sm:$0xff]  ;;  %p2503_p13 = pneg %p2502_p12  ;;  %s2506_s11 = scalar_lea.vmem %s2505_s10, 4096 }
  0x18   : > { %v191_v16 = vld [vmem:[%s4020_s2 + $0x70] sm:$0xff]  ;;  %v2703_v21 = vld [vmem:[%s173_s20] ss:$0 sm:$0xff]  ;;  %p2508_p1 = scmp.lt.s32.totalorder %s2506_s11, %s2500_s8 }
  0x19   : > { %217 = vperm.xlu1 %2431, %v180_v3   ;;  %207 = vperm.xlu0 %2430, %v178_v4   ;;  %v2246_v50 = vld [vmem:[%s176_s26] ss:$0 sm:$0xff] }
  0x1a   : > { %p2509_p2 = por %p2508_p1, %p2507_p0 }
  0x1c   : > { %p2510_p3 = pnand %p2509_p2, %p2503_p13 }
  0x1d   : > { %227 = vperm.xlu1 %2431, %v182_v5   ;;  %222 = vperm.xlu0 %2430, %v181_v6  }
  0x21   : > { %237 = vperm.xlu1 %2431, %v184_v7   ;;  %232 = vperm.xlu0 %2430, %v183_v8  }
  0x25   : > { %247 = vperm.xlu1 %2431, %v186_v9   ;;  %242 = vperm.xlu0 %2430, %v185_v10  }
  0x29   : > { %257 = vperm.xlu1 %2431, %v188_v11   ;;  %252 = vperm.xlu0 %2430, %v187_v12  }
  0x2d   : > { %267 = vperm.xlu1 %2431, %v190_v13   ;;  %262 = vperm.xlu0 %2430, %v189_v14  }
  0x31   : > { %277 = vperm.xlu1 %2431, %v192_v15   ;;  %272 = vperm.xlu0 %2430, %v191_v16  }
  0x35   : > { %2433 = vset.pattern.permute.xlu1 %v2563_v17  ;;  %2432 = vset.pattern.permute.xlu0 %v2563_v17 }
  0x36   : > { %308 = vperm.xlu1 %2433, %v178_v4   ;;  %304 = vperm.xlu0 %2432, %v177_v1  }
  0x3a   : > { %312 = vperm.xlu1 %2433, %v179_v0   ;;  %316 = vperm.xlu0 %2432, %v180_v3  }
  0x3e   : > { %320 = vperm.xlu1 %2433, %v181_v6   ;;  %324 = vperm.xlu0 %2432, %v182_v5  }
  0x42   : > { %328 = vperm.xlu1 %2433, %v183_v8   ;;  %332 = vperm.xlu0 %2432, %v184_v7  }
  0x46   : > { %336 = vperm.xlu1 %2433, %v185_v10   ;;  %340 = vperm.xlu0 %2432, %v186_v9  }
  0x4a   : > { %344 = vperm.xlu1 %2433, %v187_v12   ;;  %348 = vperm.xlu0 %2432, %v188_v11  }
  0x4e   : > { %352 = vperm.xlu1 %2433, %v189_v14   ;;  %356 = vperm.xlu0 %2432, %v190_v13  }
  0x52   : > { %360 = vperm.xlu1 %2433, %v191_v16   ;;  %364 = vperm.xlu0 %2432, %v192_v15  }
  0x56   : > { %2434 = vset.pattern.permute.xlu1 %v2564_v18  ;;  %2435 = vset.pattern.permute.xlu0 %v2564_v18 }
  0x57   : > { %400 = vperm.xlu1 %2434, %v177_v1   ;;  %404 = vperm.xlu0 %2435, %v178_v4  }
  0x5b   : > { %408 = vperm.xlu1 %2434, %v179_v0   ;;  %416 = vperm.xlu0 %2435, %v181_v6  }
  0x5f   : > { %412 = vperm.xlu1 %2434, %v180_v3   ;;  %424 = vperm.xlu0 %2435, %v183_v8  }
  0x63   : > { %420 = vperm.xlu1 %2434, %v182_v5   ;;  %432 = vperm.xlu0 %2435, %v185_v10  }
  0x67   : > { %428 = vperm.xlu1 %2434, %v184_v7   ;;  %440 = vperm.xlu0 %2435, %v187_v12  }
  0x6b   : > { %436 = vperm.xlu1 %2434, %v186_v9   ;;  %448 = vperm.xlu0 %2435, %v189_v14  }
  0x6f   : > { %444 = vperm.xlu1 %2434, %v188_v11   ;;  %456 = vperm.xlu0 %2435, %v191_v16  }
  0x73   : > { %452 = vperm.xlu1 %2434, %v190_v13  }
  0x77   : > { %460 = vperm.xlu1 %2434, %v192_v15  }
  0x90   : > { %v2695_v19 = vpop.permute.xlu1 %212  ;;  %v2697_v20 = vpop.permute.xlu0 %202 }
  0x94   : > { %v218_v22 = vpop.permute.xlu1 %217  ;;  %v2705_v23 = vpop.permute.xlu0 %207 }
  0x95   : > { %v283_v24 = vmul.f32 %v2703_v21, %v218_v22 }
  0x98   : > { %v228_v25 = vpop.permute.xlu1 %227  ;;  %v223_v26 = vpop.permute.xlu0 %222 }
  0x99   : > { %v285_v27 = vmul.f32 %v2703_v21, %v228_v25  ;;  %v284_v57 = vmul.f32 %v2703_v21, %v223_v26  ;;  %v280_v26 = vmul.f32 %v2703_v21, %v2697_v20 }
  0x9c   : > { %v238_v28 = vpop.permute.xlu1 %237  ;;  %v233_v29 = vpop.permute.xlu0 %232 }
  0x9d   : > { %v2710_v30 = vmul.f32 %v2703_v21, %v238_v28  ;;  %v286_v31 = vmul.f32 %v2703_v21, %v233_v29 }
  0xa0   : > { %v248_v32 = vpop.permute.xlu1 %247  ;;  %v243_v33 = vpop.permute.xlu0 %242 }
  0xa1   : > { %v2714_v34 = vmul.f32 %v2703_v21, %v248_v32  ;;  %v288_v35 = vmul.f32 %v2703_v21, %v243_v33 }
  0xa4   : > { %v258_v36 = vpop.permute.xlu1 %257  ;;  %v253_v37 = vpop.permute.xlu0 %252 }
  0xa5   : > { %v2718_v38 = vmul.f32 %v2703_v21, %v258_v36  ;;  %v2721_v39 = vmul.f32 %v2703_v21, %v253_v37 }
  0xa8   : > { %v268_v40 = vpop.permute.xlu1 %267  ;;  %v263_v41 = vpop.permute.xlu0 %262 }
  0xa9   : > { %v2724_v42 = vmul.f32 %v2703_v21, %v268_v40  ;;  %v2727_v43 = vmul.f32 %v2703_v21, %v263_v41 }
  0xac   : > { %v278_v44 = vpop.permute.xlu1 %277  ;;  %v273_v45 = vpop.permute.xlu0 %272 }
  0xad   : > { %v2730_v46 = vmul.f32 %v2703_v21, %v278_v44  ;;  %v2733_v47 = vmul.f32 %v2703_v21, %v273_v45 }
  0xb1   : > { %v309_v48 = vpop.permute.xlu1 %308  ;;  %v305_v49 = vpop.permute.xlu0 %304 }
  0xb2   : > { %v368_v16 = vmul.f32 %v2246_v50, %v309_v48  ;;  %v367_v17 = vmul.f32 %v2246_v50, %v305_v49 }
  0xb4   : > { %v383_v29 = vadd.f32 %v367_v17, %v280_v26 }
  0xb5   : > { %v313_v51 = vpop.permute.xlu1 %312  ;;  %v317_v52 = vpop.permute.xlu0 %316 }
  0xb6   : > { %v370_v53 = vmul.f32 %v2246_v50, %v317_v52  ;;  %v369_v28 = vmul.f32 %v2246_v50, %v313_v51 }
  0xb8   : > { %v2739_v54 = vadd.f32 %v370_v53, %v283_v24 }
  0xb9   : > { %v321_v55 = vpop.permute.xlu1 %320  ;;  %v325_v56 = vpop.permute.xlu0 %324 }
  0xba   : > { %v371_v58 = vmul.f32 %v2246_v50, %v321_v55  ;;  %v372_v59 = vmul.f32 %v2246_v50, %v325_v56 }
  0xbc   : > { %v2742_v60 = vadd.f32 %v371_v58, %v284_v57  ;;  %v2744_v61 = vadd.f32 %v372_v59, %v285_v27  ;;  %v281_v27 = vmul.f32 %v2703_v21, %v2705_v23 }
  0xbd   : > { %v329_v62 = vpop.permute.xlu1 %328  ;;  %v333_v63 = vpop.permute.xlu0 %332 }
  0xbe   : > { %v373_v0 = vmul.f32 %v2246_v50, %v329_v62  ;;  %v2746_v1 = vmul.f32 %v2246_v50, %v333_v63 }
  0xc0   : > { %v2748_v2 = vadd.f32 %v373_v0, %v286_v31  ;;  %v384_v31 = vadd.f32 %v368_v16, %v281_v27 }
  0xc1   : > { %v337_v3 = vpop.permute.xlu1 %336  ;;  %v341_v4 = vpop.permute.xlu0 %340 }
  0xc2   : > { %v375_v5 = vmul.f32 %v2246_v50, %v337_v3  ;;  %v2750_v6 = vmul.f32 %v2246_v50, %v341_v4 }
  0xc4   : > { %v2752_v7 = vadd.f32 %v375_v5, %v288_v35  ;;  %v282_v35 = vmul.f32 %v2703_v21, %v2695_v19 }
  0xc5   : > { %v345_v8 = vpop.permute.xlu1 %344  ;;  %v349_v9 = vpop.permute.xlu0 %348 }
  0xc6   : > { %v2754_v10 = vmul.f32 %v2246_v50, %v345_v8  ;;  %v2756_v11 = vmul.f32 %v2246_v50, %v349_v9  ;;  %v385_v20 = vadd.f32 %v369_v28, %v282_v35 }
  0xc9   : > { %v353_v12 = vpop.permute.xlu1 %352  ;;  %v357_v13 = vpop.permute.xlu0 %356 }
  0xca   : > { %v2758_v14 = vmul.f32 %v2246_v50, %v353_v12  ;;  %v2760_v15 = vmul.f32 %v2246_v50, %v357_v13 }
  0xcd   : > { %v361_v18 = vpop.permute.xlu1 %360  ;;  %v365_v22 = vpop.permute.xlu0 %364 }
  0xce   : > { %v2762_v24 = vmul.f32 %v2246_v50, %v361_v18  ;;  %v2764_v25 = vmul.f32 %v2246_v50, %v365_v22  ;;  %v2565_v22 = vmov 683565275  }
  0xd2   : > { %v401_v32 = vpop.permute.xlu1 %400  ;;  %v405_v33 = vpop.permute.xlu0 %404 }
  0xd3   : > { %v2772_v36 = vadd.f32 %v401_v32, %v383_v29  ;;  %v2774_v37 = vadd.f32 %v405_v33, %v384_v31  ;;  %v4023_v29 = vmov 2475754826   ;;  %v4025_v31 = vmov 2131351028  }
  0xd4   : > { %v2568_v33 = vmov 2102212464  }
  0xd5   : > { %v479_v40 = vand.u32 2147483647, %v2772_v36  ;;  %v482_v41 = vand.u32 2139095040, %v2772_v36  ;;  %v583_v44 = vand.u32 2147483647, %v2774_v37  ;;  %v586_v23 = vand.u32 2139095040, %v2774_v37 }
  0xd6   : > { %v409_v45 = vpop.permute.xlu1 %408  ;;  %v417_v63 = vpop.permute.xlu0 %416  ;;  %vm481_vm13 = vcmp.lt.s32.totalorder %v2772_v36, 0 }
  0xd7   : > { %v483_v48 = vshrl.u32 %v482_v41, 23  ;;  %v486_v49 = vand.u32 8388607, %v479_v40  ;;  %v2782_v50 = vadd.f32 %v409_v45, %v385_v20  ;;  %v587_v19 = vshrl.u32 %v586_v23, 23 }
  0xd8   : > { %v590_v21 = vand.u32 8388607, %v583_v44  ;;  %v2789_v9 = vadd.f32 %v417_v63, %v2742_v60  ;;  %v2569_v41 = vmov 920167782   ;;  %vm2894_vm14 = vcmp.le.f32.partialorder %v479_v40, 0.7853982 }
  0xd9   : > { %v2247_v51 = vadd.s32 4294967169, %v483_v48  ;;  %v2251_v52 = vadd.s32 4294967169, %v587_v19  ;;  %v690_v53 = vand.u32 2139095040, %v2782_v50  ;;  %v487_v55 = vor.u32 8388608, %v486_v49 }
  0xda   : > { %v591_v57 = vor.u32 8388608, %v590_v21  ;;  %v4022_v59 = vand.u32 2147483647, %v2782_v50  ;;  %v4027_v21 = vmov 1326507024  }
  0xdb   : > { %v489_v56 = vadd.s32 1, %v2247_v51  ;;  %v593_v58 = vadd.s32 1, %v2251_v52  ;;  %v691_v62 = vshrl.u32 %v690_v53, 23  ;;  %v2791_v12 = vshll.u32 %v487_v55, 8 }
  0xdc   : > { %v2795_v16 = vshll.u32 %v591_v57, 8  ;;  %v2799_v17 = vand.u32 8388607, %v4022_v59 }
  0xdd   : > { %vm490_vm0 = vcmp.gt.s32.totalorder %v489_v56, 0  ;;  %vm594_vm1 = vcmp.gt.s32.totalorder %v593_v58, 0  ;;  %v2255_v3 = vadd.s32 4294967169, %v691_v62 }
  0xde   : > { %v491_v0 = vsel %vm490_vm0, %v489_v56, 0  ;;  %v595_v8 = vsel %vm594_vm1, %v593_v58, 0 }
  0xdf   : > { %v492_v4 = vshrl.u32 %v491_v0, 5  ;;  %v493_v5 = vand.u32 31, %v491_v0  ;;  %v2793_v13 = vshrl.u32 %v595_v8, 5  ;;  %v597_v27 = vand.u32 31, %v595_v8 }
  0xe0   : > { %v2802_v28 = vadd.s32 1, %v2255_v3 }
  0xe1   : > { %v494_v18 = vsub.s32 32, %v493_v5  ;;  %v496_v26 = vshll.u32 %v2565_v22, %v493_v5  ;;  %v499_v60 = vshll.u32 %v4023_v29, %v493_v5  ;;  %v502_v32 = vshll.u32 %v4025_v31, %v493_v5 }
  0xe2   : > { %v505_v35 = vshll.u32 %v2568_v33, %v493_v5  ;;  %v508_v20 = vshll.u32 %v2569_v41, %v493_v5  ;;  %vm511_vm2 = vcmp.lt.s32.totalorder %v492_v4, 1  ;;  %vm512_vm3 = vcmp.lt.s32.totalorder %v492_v4, 2 }
  0xe3   : > { %v497_v23 = vshrl.u32 %v4023_v29, %v494_v18  ;;  %v500_v45 = vshrl.u32 %v4025_v31, %v494_v18  ;;  %v503_v48 = vshrl.u32 %v2568_v33, %v494_v18  ;;  %v495_v49 = vshrl.u32 %v2565_v22, %v494_v18 }
  0xe4   : > { %v506_v19 = vshrl.u32 %v2569_v41, %v494_v18  ;;  %v509_v51 = vshrl.u32 %v4027_v21, %v494_v18  ;;  %v598_v56 = vsub.s32 32, %v597_v27  ;;  %vm513_vm4 = vcmp.lt.s32.totalorder %v492_v4, 3 }
  0xe5   : > { %v498_v52 = vor.u32 %v497_v23, %v496_v26  ;;  %v501_v53 = vor.u32 %v500_v45, %v499_v60  ;;  %v504_v55 = vor.u32 %v503_v48, %v502_v32  ;;  %vm514_vm5 = vcmp.lt.s32.totalorder %v492_v4, 4 }
  0xe6   : > { %v507_v57 = vor.u32 %v506_v19, %v505_v35  ;;  %v510_v58 = vor.u32 %v509_v51, %v508_v20  ;;  %v600_v18 = vshll.u32 %v2565_v22, %v597_v27  ;;  %v601_v32 = vshrl.u32 %v4023_v29, %v598_v56 }
  0xe7   : > { %v515_v62 = vsel %vm511_vm2, %v495_v49, %v498_v52  ;;  %v516_v63 = vsel %vm514_vm5, %v504_v55, 2102212464  ;;  %v519_v0 = vsel %vm511_vm2, %v498_v52, %v501_v53  ;;  %v523_v3 = vsel %vm511_vm2, %v501_v53, %v504_v55 }
  0xe8   : > { %v517_v5 = vsel %vm513_vm4, %v501_v53, %v516_v63  ;;  %v520_v8 = vsel %vm514_vm5, %v507_v57, 920167782  ;;  %v524_v59 = vsel %vm514_vm5, %v510_v58, 1326507024  ;;  %v603_v35 = vshll.u32 %v4023_v29, %v597_v27 }
  0xe9   : > { %v521_v26 = vsel %vm513_vm4, %v504_v55, %v520_v8  ;;  %v525_v60 = vsel %vm513_vm4, %v507_v57, %v524_v59  ;;  %v518_v20 = vsel %vm512_vm3, %v515_v62, %v517_v5  ;;  %v604_v48 = vshrl.u32 %v4025_v31, %v598_v56 }
  0xea   : > { %v522_v23 = vsel %vm512_vm3, %v519_v0, %v521_v26  ;;  %v526_v45 = vsel %vm512_vm3, %v523_v3, %v525_v60  ;;  %v602_v59 = vor.u32 %v601_v32, %v600_v18  ;;  %v606_v55 = vshll.u32 %v4025_v31, %v597_v27 }
  0xeb   : > { %v2825_v49 = vmul.u32.u64.low %v2791_v12, %v526_v45  ;;  %v2826_v19 = vmul.u32.u64.high %v2791_v12, %v526_v45, %v2825_v49  ;;  %v2829_v51 = vmul.u32.u64.low %v2791_v12, %v522_v23  ;;  %v2830_v52 = vmul.u32.u64.high %v2791_v12, %v522_v23, %v2829_v51 }
  0xec   : > { %v605_v53 = vor.u32 %v604_v48, %v603_v35  ;;  %v607_v57 = vshrl.u32 %v2568_v33, %v598_v56  ;;  %v599_v58 = vshrl.u32 %v2565_v22, %v598_v56  ;;  %v609_v4 = vshll.u32 %v2568_v33, %v597_v27 }
  0xed   : > { %v610_v62 = vshrl.u32 %v2569_v41, %v598_v56  ;;  %v613_v63 = vshrl.u32 %v4027_v21, %v598_v56  ;;  %v534_v0 = vmul.u32 %v2791_v12, %v518_v20  ;;  %v612_v5 = vshll.u32 %v2569_v41, %v597_v27 }
  0xee   : > { %v608_v3 = vor.u32 %v607_v57, %v606_v55  ;;  %vm615_vm6 = vcmp.lt.s32.totalorder %v2793_v13, 1  ;;  %vm536_vm7 = vc.u32 %v2826_v19, %v2829_v51  ;;  %v537_v8 = vadd.s32 1, %v2830_v52 }
  0xef   : > { %v611_v18 = vor.u32 %v610_v62, %v609_v4  ;;  %vm616_vm8 = vcmp.lt.s32.totalorder %v2793_v13, 2  ;;  %v614_v26 = vor.u32 %v613_v63, %v612_v5  ;;  %vm617_vm9 = vcmp.lt.s32.totalorder %v2793_v13, 3 }
  0xf0   : > { %vm618_vm10 = vcmp.lt.s32.totalorder %v2793_v13, 4  ;;  %v623_v56 = vsel %vm615_vm6, %v602_v59, %v605_v53  ;;  %v538_v12 = vsel %vm536_vm7, %v537_v8, %v2830_v52  ;;  %v627_v27 = vsel %vm615_vm6, %v605_v53, %v608_v3 }
  0xf1   : > { %v620_v60 = vsel %vm618_vm10, %v608_v3, 2102212464  ;;  %v624_v32 = vsel %vm618_vm10, %v611_v18, 920167782  ;;  %v539_v35 = vadd.s32 %v538_v12, %v534_v0  ;;  %v619_v20 = vsel %vm615_vm6, %v599_v58, %v602_v59 }
  0xf2   : > { %v625_v23 = vsel %vm617_vm9, %v608_v3, %v624_v32  ;;  %v628_v45 = vsel %vm618_vm10, %v614_v26, 1326507024  ;;  %v621_v48 = vsel %vm617_vm9, %v605_v53, %v620_v60  ;;  %vm698_vm11 = vcmp.gt.s32.totalorder %v2802_v28, 0 }
  0xf3   : > { %v626_v49 = vsel %vm616_vm8, %v623_v56, %v625_v23  ;;  %v629_v55 = vsel %vm617_vm9, %v611_v18, %v628_v45  ;;  %v540_v57 = vadd.s32 536870912, %v539_v35  ;;  %v699_v53 = vsel %vm698_vm11, %v2802_v28, 0 }
  0xf4   : > { %v630_v4 = vsel %vm616_vm8, %v627_v27, %v629_v55  ;;  %v2853_v52 = vmul.u32.u64.low %v2795_v16, %v626_v49  ;;  %v2854_v62 = vmul.u32.u64.high %v2795_v16, %v626_v49, %v2853_v52  ;;  %v622_v0 = vsel %vm616_vm8, %v619_v20, %v621_v48 }
  0xf5   : > { %v2858_v59 = vmul.u32.u64.low %v2795_v16, %v630_v4  ;;  %v2859_v58 = vmul.u32.u64.high %v2795_v16, %v630_v4, %v2858_v59  ;;  %v541_v63 = vshrl.u32 %v540_v57, 30  ;;  %v701_v3 = vand.u32 31, %v699_v53 }
  0xf6   : > { %v898_v5 = vand.u32 2139095040, %v2789_v9  ;;  %v641_v18 = vadd.s32 1, %v2854_v62  ;;  %v695_v26 = vor.u32 8388608, %v2799_v17  ;;  %v638_v56 = vmul.u32 %v2795_v16, %v622_v0 }
  0xf7   : > { %v542_v8 = vshll.u32 %v541_v63, 30  ;;  %vm640_vm12 = vc.u32 %v2859_v58, %v2853_v52  ;;  %v702_v12 = vsub.s32 32, %v701_v3  ;;  %v535_v27 = vadd.s32 %v2829_v51, %v2826_v19 }
  0xf8   : > { %v642_v28 = vsel %vm640_vm12, %v641_v18, %v2854_v62  ;;  %v899_v13 = vshrl.u32 %v898_v5, 23  ;;  %v2876_v23 = vshll.u32 %v695_v26, 8  ;;  %v895_v16 = vand.u32 2147483647, %v2789_v9 }
  0xf9   : > { %v2870_v60 = vsub.s32 %v539_v35, %v542_v8  ;;  %v643_v32 = vadd.s32 %v642_v28, %v638_v56  ;;  %v2879_v45 = vshrl.u32 %v699_v53, 5  ;;  %v705_v35 = vshrl.u32 %v4023_v29, %v702_v12 }
  0xfa   : > { %v708_v48 = vshrl.u32 %v4025_v31, %v702_v12  ;;  %v711_v55 = vshrl.u32 %v2568_v33, %v702_v12  ;;  %v714_v57 = vshrl.u32 %v2569_v41, %v702_v12  ;;  %v2886_v19 = vadd.s32 4294967169, %v899_v13 }
  0xfb   : > { %v545_v20 = vsub.s32 0, %v2870_v60  ;;  %v644_v17 = vadd.s32 536870912, %v643_v32  ;;  %v565_v51 = vsub.s32 4, %v541_v63  ;;  %v704_v62 = vshll.u32 %v2565_v22, %v701_v3 }
  0xfc   : > { %v707_v59 = vshll.u32 %v4023_v29, %v701_v3  ;;  %v710_v5 = vshll.u32 %v4025_v31, %v701_v3  ;;  %v713_v8 = vshll.u32 %v2568_v33, %v701_v3  ;;  %v717_v18 = vshrl.u32 %v4027_v21, %v702_v12 }
  0xfd   : > { %v2248_v49 = vmin.u32 %v545_v20, %v2870_v60  ;;  %v2888_v4 = vshrl.u32 %v644_v17, 30  ;;  %v706_v56 = vor.u32 %v705_v35, %v704_v62  ;;  %v2904_v13 = vand.u32 8388607, %v895_v16 }
  0xfe   : > { %v709_v28 = vor.u32 %v708_v48, %v707_v59  ;;  %v712_v40 = vor.u32 %v711_v55, %v710_v5  ;;  %v715_v17 = vor.u32 %v714_v57, %v713_v8  ;;  %v716_v29 = vshll.u32 %v2569_v41, %v701_v3 }
  0xff   : > { %v547_v0 = vclz %v2248_v49  ;;  %v646_v26 = vshll.u32 %v2888_v4, 30  ;;  %v566_v49 = vsel %vm481_vm13, %v565_v51, %v541_v63  ;;  %v703_v21 = vshrl.u32 %v2565_v22, %v702_v12 }
 0x100   : > { %vm719_vm15 = vcmp.lt.s32.totalorder %v2879_v45, 1  ;;  %v718_v35 = vor.u32 %v717_v18, %v716_v29  ;;  %vm720_vm1 = vcmp.lt.s32.totalorder %v2879_v45, 2  ;;  %vm721_vm2 = vcmp.lt.s32.totalorder %v2879_v45, 3 }
 0x101   : > { %v2249_v20 = vadd.s32 4294967294, %v547_v0  ;;  %v2909_v31 = vsub.s32 %v643_v32, %v646_v26  ;;  %vm585_vm3 = vcmp.lt.s32.totalorder %v2774_v37, 0  ;;  %vm722_vm4 = vcmp.lt.s32.totalorder %v2879_v45, 4 }
 0x102   : > { %v727_v63 = vsel %vm719_vm15, %v706_v56, %v709_v28  ;;  %v724_v55 = vsel %vm722_vm4, %v712_v40, 2102212464  ;;  %v728_v57 = vsel %vm722_vm4, %v715_v17, 920167782  ;;  %v731_v59 = vsel %vm719_vm15, %v709_v28, %v712_v40 }
 0x103   : > { %vm2250_vm0 = vcmp.lt.s32.totalorder %v2249_v20, 0  ;;  %v649_v3 = vsub.s32 0, %v2909_v31  ;;  %v729_v62 = vsel %vm721_vm2, %v712_v40, %v728_v57  ;;  %v732_v18 = vsel %vm722_vm4, %v718_v35, 1326507024 }
 0x104   : > { %v550_v48 = vsel %vm2250_vm0, 0, %v2249_v20  ;;  %v730_v8 = vsel %vm720_vm1, %v727_v63, %v729_v62  ;;  %v568_v26 = vsel %vm2894_vm14, 0, %v566_v49  ;;  %vm2932_vm5 = vcmp.le.f32.partialorder %v583_v44, 0.7853982 }
 0x105   : > { %v551_v32 = vsub.s32 32, %v550_v48  ;;  %v555_v12 = vsub.s32 4294967266, %v550_v48  ;;  %v552_v29 = vshll.u32 %v2870_v60, %v550_v48  ;;  %v2252_v51 = vmin.u32 %v649_v3, %v2909_v31 }
 0x106   : > { %v723_v48 = vsel %vm719_vm15, %v703_v21, %v706_v56  ;;  %v669_v35 = vsub.s32 4, %v2888_v4  ;;  %v733_v49 = vsel %vm721_vm2, %v715_v17, %v732_v18  ;;  %v572_v57 = vadd.s32 3, %v568_v26 }
 0x107   : > { %v553_v0 = vshrl.u32 %v535_v27, %v551_v32  ;;  %v556_v5 = vadd.s32 127, %v555_v12  ;;  %v651_v20 = vclz %v2252_v51  ;;  %v725_v27 = vsel %vm721_vm2, %v709_v28, %v724_v55 }
 0x108   : > { %v734_v44 = vsel %vm720_vm1, %v731_v59, %v733_v49  ;;  %v2946_v32 = vmul.u32.u64.low %v2876_v23, %v730_v8  ;;  %v2947_v12 = vmul.u32.u64.high %v2876_v23, %v730_v8, %v2946_v32  ;;  %v726_v56 = vsel %vm720_vm1, %v723_v48, %v725_v27  ;;  %v413_v27 = vpop.permute.xlu1 %412 }
 0x109   : > { %v554_v40 = vor.u32 %v553_v0, %v552_v29  ;;  %v557_v3 = vshll.u32 %v556_v5, 23  ;;  %v2253_v63 = vadd.s32 4294967294, %v651_v20  ;;  %v639_v17 = vadd.s32 %v2853_v52, %v2859_v58 }
 0x10a   : > { %v2953_v28 = vmul.u32.u64.low %v2876_v23, %v734_v44  ;;  %v2954_v55 = vmul.u32.u64.high %v2876_v23, %v734_v44, %v2953_v28  ;;  %v905_v29 = vadd.s32 1, %v2886_v19  ;;  %v670_v0 = vsel %vm585_vm3, %v669_v35, %v2888_v4 }
 0x10b   : > { %v558_v21 = vor.u32 4788187, %v557_v3  ;;  %vm2254_vm6 = vcmp.lt.s32.totalorder %v2253_v63, 0  ;;  %v561_v62 = vcvt.s32.f32 %v554_v40  ;;  %v742_v8 = vmul.u32 %v2876_v23, %v726_v56 }
 0x10c   : > { %v654_v59 = vsel %vm2254_vm6, 0, %v2253_v63  ;;  %v745_v18 = vadd.s32 1, %v2947_v12  ;;  %vm744_vm7 = vc.u32 %v2954_v55, %v2946_v32  ;;  %vm906_vm8 = vcmp.gt.s32.totalorder %v905_v29, 0 }
 0x10d   : > { %v559_v51 = vand.u32 2147483647, %v558_v21  ;;  %v655_v45 = vsub.s32 32, %v654_v59  ;;  %v659_v5 = vsub.s32 4294967266, %v654_v59  ;;  %v656_v20 = vshll.u32 %v2909_v31, %v654_v59 }
 0x10e   : > { %v746_v19 = vsel %vm744_vm7, %v745_v18, %v2947_v12  ;;  %v907_v48 = vsel %vm906_vm8, %v905_v29, 0  ;;  %v672_v40 = vsel %vm2932_vm5, 0, %v670_v0  ;;  %v2973_v21 = vadd.f32 %v413_v27, %v2739_v54 }
 0x10f   : > { %v562_v26 = vmul.f32 %v561_v62, %v559_v51  ;;  %v657_v52 = vshrl.u32 %v639_v17, %v655_v45  ;;  %v660_v58 = vadd.s32 127, %v659_v5  ;;  %v747_v23 = vadd.s32 %v746_v19, %v742_v8 }
 0x110   : > { %v909_v3 = vand.u32 31, %v907_v48  ;;  %v2978_v56 = vand.u32 3, %v572_v57  ;;  %v2980_v17 = vadd.s32 3, %v672_v40  ;;  %v903_v51 = vor.u32 8388608, %v2904_v13 }
 0x111   : > { %v563_v4 = vxor.u32 2147483648, %v562_v26  ;;  %v658_v35 = vor.u32 %v657_v52, %v656_v20  ;;  %v661_v49 = vshll.u32 %v660_v58, 23  ;;  %v748_v63 = vadd.s32 536870912, %v747_v23 }
 0x112   : > { %v910_v44 = vsub.s32 32, %v909_v3  ;;  %v4035_v62 = vmov 2475754826   ;;  %v4036_v54 = vmov 2131351028   ;;  %vm689_vm9 = vcmp.lt.s32.totalorder %v2782_v50, 0 }
 0x113   : > { %v564_v31 = vsel %vm481_vm13, %v563_v4, %v562_v26  ;;  %v662_v28 = vor.u32 4788187, %v661_v49  ;;  %v749_v29 = vshrl.u32 %v748_v63, 30  ;;  %v665_v45 = vcvt.s32.f32 %v658_v35 }
 0x114   : > { %v567_v12 = vsel %vm2894_vm14, %v2772_v36, %v564_v31  ;;  %v913_v59 = vshrl.u32 %v4035_v62, %v910_v44  ;;  %v916_v5 = vshrl.u32 %v4036_v54, %v910_v44  ;;  %v2986_v8 = vshrl.u32 %v907_v48, 5 }
 0x115   : > { %2436 = vcosq.f32 %v567_v12  ;;  %v663_v0 = vand.u32 2147483647, %v662_v28  ;;  %v750_v53 = vshll.u32 %v749_v29, 30  ;;  %v912_v57 = vshll.u32 %v2565_v22, %v909_v3 }
 0x116   : > { %2438 = vsinq.f32 %v567_v12  ;;  %v919_v18 = vshrl.u32 %v2568_v33, %v910_v44  ;;  %v915_v20 = vshll.u32 %v4035_v62, %v909_v3  ;;  %v921_v13 = vshll.u32 %v2568_v33, %v909_v3 }
 0x117   : > { %v666_v26 = vmul.f32 %v665_v45, %v663_v0  ;;  %v922_v52 = vshrl.u32 %v2569_v41, %v910_v44  ;;  %v2993_v58 = vsub.s32 %v747_v23, %v750_v53  ;;  %v914_v19 = vor.u32 %v913_v59, %v912_v57 }
 0x118   : > { %v918_v27 = vshll.u32 %v4036_v54, %v909_v3  ;;  %v794_v4 = vand.u32 2139095040, %v2973_v21  ;;  %v917_v40 = vor.u32 %v916_v5, %v915_v20  ;;  %v4037_v49 = vmov 1326507024  }
 0x119   : > { %v667_v48 = vxor.u32 2147483648, %v666_v26  ;;  %v923_v35 = vor.u32 %v922_v52, %v921_v13  ;;  %v925_v31 = vshrl.u32 %v4037_v49, %v910_v44  ;;  %v743_v63 = vadd.s32 %v2946_v32, %v2954_v55 }
 0x11a   : > { %v753_v12 = vsub.s32 0, %v2993_v58  ;;  %v920_v28 = vor.u32 %v919_v18, %v918_v27  ;;  %v924_v0 = vshll.u32 %v2569_v41, %v909_v3  ;;  %vm578_vm10 = vcmp.eq.s32.totalorder %v2978_v56, 2 }
 0x11b   : > { %v668_v23 = vsel %vm585_vm3, %v667_v48, %v666_v26  ;;  %v773_v59 = vsub.s32 4, %v749_v29  ;;  %vm927_vm11 = vcmp.lt.s32.totalorder %v2986_v8, 1  ;;  %v3006_v45 = vshll.u32 %v903_v51, 8 }
 0x11c   : > { %vm575_vm12 = vcmp.eq.s32.totalorder %v2978_v56, 0  ;;  %v671_v32 = vsel %vm2932_vm5, %v2774_v37, %v668_v23  ;;  %v2256_v55 = vmin.u32 %v753_v12, %v2993_v58  ;;  %v926_v3 = vor.u32 %v925_v31, %v924_v0 }
 0x11d   : > { %vm930_vm13 = vcmp.lt.s32.totalorder %v2986_v8, 4  ;;  %vm574_vm14 = vcmp.lt.s32.totalorder %v2978_v56, 2  ;;  %2440 = vcosq.f32 %v671_v32  ;;  %v911_v5 = vshrl.u32 %v2565_v22, %v910_v44 }
 0x11e   : > { %v935_v51 = vsel %vm927_vm11, %v914_v19, %v917_v40  ;;  %v936_v53 = vsel %vm930_vm13, %v923_v35, 920167782  ;;  %vm571_vm15 = vweird.f32 %v2772_v36  ;;  %2442 = vsinq.f32 %v671_v32 }
 0x11f   : > { %v4038_v60 = vand.u32 2147483647, %v2782_v50  ;;  %v755_v18 = vclz %v2256_v55  ;;  %vm929_vm1 = vcmp.lt.s32.totalorder %v2986_v8, 3  ;;  %v932_v44 = vsel %vm930_vm13, %v920_v28, 2102212464 }
 0x120   : > { %v774_v26 = vsel %vm689_vm9, %v773_v59, %v749_v29  ;;  %vm928_vm2 = vcmp.lt.s32.totalorder %v2986_v8, 2  ;;  %v937_v20 = vsel %vm929_vm1, %v920_v28, %v936_v53  ;;  %v939_v13 = vsel %vm927_vm11, %v917_v40, %v920_v28 }
 0x121   : > { %vm3023_vm0 = vcmp.le.f32.partialorder %v4038_v60, 0.7853982  ;;  %v2257_v52 = vadd.s32 4294967294, %v755_v18  ;;  %v931_v27 = vsel %vm927_vm11, %v911_v5, %v914_v19  ;;  %v938_v48 = vsel %vm928_vm2, %v935_v51, %v937_v20 }
 0x122   : > { %v940_v31 = vsel %vm930_vm13, %v926_v3, 1326507024  ;;  %v2437_v12 = vpop.eup %2436  ;;  %v933_v0 = vsel %vm929_vm1, %v917_v40, %v932_v44  ;;  %v3043_v29 = vmul.u32.u64.low %v3006_v45, %v938_v48  ;;  %v3044_v59 = vmul.u32.u64.high %v3006_v45, %v938_v48, %v3043_v29 }
 0x123   : > { %v941_v23 = vsel %vm929_vm1, %v923_v35, %v940_v31  ;;  %v2439_v32 = vpop.eup %2438  ;;  %v579_v28 = vxor.u32 2147483648, %v2437_v12  ;;  %vm2258_vm3 = vcmp.lt.s32.totalorder %v2257_v52, 0  ;;  %v795_v55 = vshrl.u32 %v794_v4, 23 }
 0x124   : > { %v942_v19 = vsel %vm928_vm2, %v939_v13, %v941_v23  ;;  %v576_v5 = vxor.u32 2147483648, %v2439_v32  ;;  %v758_v51 = vsel %vm2258_vm3, 0, %v2257_v52  ;;  %v934_v18 = vsel %vm928_vm2, %v931_v27, %v933_v0 }
 0x125   : > { %v3052_v3 = vmul.u32.u64.low %v3006_v45, %v942_v19  ;;  %v3053_v40 = vmul.u32.u64.high %v3006_v45, %v942_v19, %v3052_v3  ;;  %v580_v35 = vsel %vm578_vm10, %v579_v28, %v2439_v32  ;;  %v759_v53 = vsub.s32 32, %v758_v51 }
 0x126   : > { %v763_v60 = vsub.s32 4294967266, %v758_v51  ;;  %v577_v44 = vsel %vm575_vm12, %v2437_v12, %v576_v5  ;;  %v677_v20 = vand.u32 3, %v2980_v17  ;;  %v953_v4 = vadd.s32 1, %v3044_v59  ;;  %v425_v17 = vpop.permute.xlu0 %424 }
 0x127   : > { %v2259_v13 = vadd.s32 4294967169, %v795_v55  ;;  %v581_v52 = vsel %vm574_vm14, %v577_v44, %v580_v35  ;;  %v760_v48 = vshll.u32 %v2993_v58, %v758_v51  ;;  %v761_v31 = vshrl.u32 %v743_v63, %v759_v53 }
 0x128   : > { %v764_v23 = vadd.s32 127, %v763_v60  ;;  %v582_v32 = vsel %vm571_vm15, nan, %v581_v52  ;;  %v776_v8 = vsel %vm3023_vm0, 0, %v774_v26  ;;  %v950_v27 = vmul.u32 %v3006_v45, %v934_v18 }
 0x129   : > { %vm952_vm4 = vc.u32 %v3053_v40, %v3043_v29  ;;  %2143 = vst [vmem:[%s3073_s29] sm:$0xff] %v582_v32  ;;  %v762_v56 = vor.u32 %v761_v31, %v760_v48  ;;  %v801_v12 = vadd.s32 1, %v2259_v13  ;;  %v791_v0 = vand.u32 2147483647, %v2973_v21 }
 0x12a   : > { %v765_v58 = vshll.u32 %v764_v23, 23  ;;  %v954_v63 = vsel %vm952_vm4, %v953_v4, %v3044_v59  ;;  %v2441_v28 = vpop.eup %2440  ;;  %vm682_vm5 = vcmp.eq.s32.totalorder %v677_v20, 2  ;;  %v3079_v45 = vadd.f32 %v425_v17, %v2748_v2 }
 0x12b   : > { %v955_v36 = vadd.s32 %v954_v63, %v950_v27  ;;  %vm802_vm6 = vcmp.gt.s32.totalorder %v801_v12, 0  ;;  %v2443_v19 = vpop.eup %2442  ;;  %v683_v55 = vxor.u32 2147483648, %v2441_v28  ;;  %v780_v5 = vadd.s32 3, %v776_v8 }
 0x12c   : > { %v766_v26 = vor.u32 4788187, %v765_v58  ;;  %v803_v3 = vsel %vm802_vm6, %v801_v12, 0  ;;  %v680_v35 = vxor.u32 2147483648, %v2443_v19  ;;  %v769_v60 = vcvt.s32.f32 %v762_v56 }
 0x12d   : > { %v956_v51 = vadd.s32 536870912, %v955_v36  ;;  %v805_v59 = vand.u32 31, %v803_v3  ;;  %vm679_vm7 = vcmp.eq.s32.totalorder %v677_v20, 0  ;;  %v684_v18 = vsel %vm682_vm5, %v683_v55, %v2443_v19 }
 0x12e   : > { %v767_v53 = vand.u32 2147483647, %v766_v26  ;;  %v798_v4 = vand.u32 8388607, %v791_v0  ;;  %vm678_vm8 = vcmp.lt.s32.totalorder %v677_v20, 2  ;;  %v681_v2 = vsel %vm679_vm7, %v2441_v28, %v680_v35 }
 0x12f   : > { %v3081_v44 = vshrl.u32 %v956_v51, 30  ;;  %v806_v52 = vsub.s32 32, %v805_v59  ;;  %vm675_vm10 = vweird.f32 %v2774_v37  ;;  %v685_v48 = vsel %vm678_vm8, %v681_v2, %v684_v18 }
 0x130   : > { %v770_v13 = vmul.f32 %v769_v60, %v767_v53  ;;  %v686_v23 = vsel %vm675_vm10, nan, %v685_v48  ;;  %v3087_v8 = vand.u32 3, %v780_v5  ;;  %v799_v56 = vor.u32 8388608, %v798_v4 }
 0x131   : > { %v958_v31 = vshll.u32 %v3081_v44, 30  ;;  %v809_v27 = vshrl.u32 %v4035_v62, %v806_v52  ;;  %2144 = vst [vmem:[%s3073_s29 + $0x8] sm:$0xff] %v686_v23  ;;  %v812_v20 = vshrl.u32 %v4036_v54, %v806_v52  ;;  %v1106_v58 = vand.u32 2139095040, %v3079_v45 }
 0x132   : > { %v771_v32 = vxor.u32 2147483648, %v770_v13  ;;  %v804_v63 = vshrl.u32 %v803_v3, 5  ;;  %v808_v12 = vshll.u32 %v2565_v22, %v805_v59  ;;  %v815_v28 = vshrl.u32 %v2568_v33, %v806_v52 }
 0x133   : > { %v3091_v17 = vsub.s32 %v955_v36, %v958_v31  ;;  %v811_v19 = vshll.u32 %v4035_v62, %v805_v59  ;;  %v814_v55 = vshll.u32 %v4036_v54, %v805_v59  ;;  %v817_v51 = vshll.u32 %v2568_v33, %v805_v59 }
 0x134   : > { %v772_v37 = vsel %vm689_vm9, %v771_v32, %v770_v13  ;;  %v810_v5 = vor.u32 %v809_v27, %v808_v12  ;;  %v818_v3 = vshrl.u32 %v2569_v41, %v806_v52  ;;  %v820_v57 = vshll.u32 %v2569_v41, %v805_v59 }
 0x135   : > { %v775_v26 = vsel %vm3023_vm0, %v2782_v50, %v772_v37  ;;  %v961_v36 = vsub.s32 0, %v3091_v17  ;;  %v813_v53 = vor.u32 %v812_v20, %v811_v19  ;;  %v816_v60 = vor.u32 %v815_v28, %v814_v55 }
 0x136   : > { %2444 = vcosq.f32 %v775_v26  ;;  %v819_v18 = vor.u32 %v818_v3, %v817_v51  ;;  %v821_v4 = vshrl.u32 %v4037_v49, %v806_v52  ;;  %v839_v2 = vshll.u32 %v799_v56, 8 }
 0x137   : > { %2446 = vsinq.f32 %v775_v26  ;;  %v2264_v35 = vmin.u32 %v961_v36, %v3091_v17  ;;  %v807_v48 = vshrl.u32 %v2565_v22, %v806_v52  ;;  %vm823_vm9 = vcmp.lt.s32.totalorder %v804_v63, 1 }
 0x138   : > { %v1107_v31 = vshrl.u32 %v1106_v58, 23  ;;  %vm897_vm11 = vcmp.lt.s32.totalorder %v2789_v9, 0  ;;  %v822_v23 = vor.u32 %v821_v4, %v820_v57  ;;  %vm824_vm12 = vcmp.lt.s32.totalorder %v804_v63, 2 }
 0x139   : > { %v963_v13 = vclz %v2264_v35  ;;  %vm825_vm13 = vcmp.lt.s32.totalorder %v804_v63, 3  ;;  %vm826_vm14 = vcmp.lt.s32.totalorder %v804_v63, 4  ;;  %v831_v20 = vsel %vm823_vm9, %v810_v5, %v813_v53 }
 0x13a   : > { %v828_v27 = vsel %vm826_vm14, %v816_v60, 2102212464  ;;  %v832_v37 = vsel %vm826_vm14, %v819_v18, 920167782  ;;  %v827_v12 = vsel %vm823_vm9, %v807_v48, %v810_v5  ;;  %v835_v28 = vsel %vm823_vm9, %v813_v53, %v816_v60 }
 0x13b   : > { %v2265_v32 = vadd.s32 4294967294, %v963_v13  ;;  %v833_v59 = vsel %vm825_vm13, %v816_v60, %v832_v37  ;;  %v836_v26 = vsel %vm826_vm14, %v822_v23, 1326507024  ;;  %vm3114_vm15 = vcmp.le.f32.partialorder %v895_v16, 0.7853982 }
 0x13c   : > { %v829_v56 = vsel %vm825_vm13, %v813_v53, %v828_v27  ;;  %v834_v58 = vsel %vm824_vm12, %v831_v20, %v833_v59  ;;  %v837_v36 = vsel %vm825_vm13, %v819_v18, %v836_v26  ;;  %v951_v5 = vadd.s32 %v3043_v29, %v3053_v40 }
 0x13d   : > { %vm2266_vm0 = vcmp.lt.s32.totalorder %v2265_v32, 0  ;;  %v838_v55 = vsel %vm824_vm12, %v835_v28, %v837_v36  ;;  %v3120_v51 = vmul.u32.u64.low %v839_v2, %v834_v58  ;;  %v3121_v3 = vmul.u32.u64.high %v839_v2, %v834_v58, %v3120_v51 }
 0x13e   : > { %v966_v19 = vsel %vm2266_vm0, 0, %v2265_v32  ;;  %v981_v60 = vsub.s32 4, %v3081_v44  ;;  %v3127_v57 = vmul.u32.u64.low %v839_v2, %v838_v55  ;;  %v3128_v4 = vmul.u32.u64.high %v839_v2, %v838_v55, %v3127_v57 }
 0x13f   : > { %v967_v35 = vsub.s32 32, %v966_v19  ;;  %v971_v16 = vsub.s32 4294967266, %v966_v19  ;;  %v1103_v53 = vand.u32 2147483647, %v3079_v45  ;;  %v2271_v18 = vadd.s32 4294967169, %v1107_v31 }
 0x140   : > { %v968_v13 = vshll.u32 %v3091_v17, %v966_v19  ;;  %v830_v32 = vsel %vm824_vm12, %v827_v12, %v829_v56  ;;  %vm782_vm1 = vcmp.lt.s32.totalorder %v3087_v8, 2  ;;  %vm783_vm2 = vcmp.eq.s32.totalorder %v3087_v8, 0 }
 0x141   : > { %v969_v48 = vshrl.u32 %v951_v5, %v967_v35  ;;  %v972_v23 = vadd.s32 127, %v971_v16  ;;  %v849_v29 = vadd.s32 1, %v3121_v3  ;;  %v1113_v40 = vadd.s32 1, %v2271_v18  ;;  %v421_v16 = vpop.permute.xlu1 %420 }
 0x142   : > { %vm786_vm3 = vcmp.eq.s32.totalorder %v3087_v8, 2  ;;  %v982_v17 = vsel %vm897_vm11, %v981_v60, %v3081_v44  ;;  %v846_v63 = vmul.u32 %v839_v2, %v830_v32  ;;  %vm848_vm4 = vc.u32 %v3128_v4, %v3120_v51 }
 0x143   : > { %v2445_v27 = vpop.eup %2444  ;;  %v970_v20 = vor.u32 %v969_v48, %v968_v13  ;;  %v973_v37 = vshll.u32 %v972_v23, 23  ;;  %vm1114_vm5 = vcmp.gt.s32.totalorder %v1113_v40, 0  ;;  %v850_v26 = vsel %vm848_vm4, %v849_v29, %v3121_v3 }
 0x144   : > { %v2447_v31 = vpop.eup %2446  ;;  %v787_v59 = vxor.u32 2147483648, %v2445_v27  ;;  %v1110_v56 = vand.u32 8388607, %v1103_v53  ;;  %v984_v36 = vsel %vm3114_vm15, 0, %v982_v17  ;;  %v851_v44 = vadd.s32 %v850_v26, %v846_v63 }
 0x145   : > { %v784_v12 = vxor.u32 2147483648, %v2447_v31  ;;  %v974_v28 = vor.u32 4788187, %v973_v37  ;;  %v1115_v19 = vsel %vm1114_vm5, %v1113_v40, 0  ;;  %v977_v5 = vcvt.s32.f32 %v970_v20 }
 0x146   : > { %v788_v58 = vsel %vm786_vm3, %v787_v59, %v2447_v31  ;;  %v1117_v35 = vand.u32 31, %v1115_v19  ;;  %vm779_vm6 = vweird.f32 %v2782_v50  ;;  %v852_v60 = vadd.s32 536870912, %v851_v44 }
 0x147   : > { %v785_v2 = vsel %vm783_vm2, %v2445_v27, %v784_v12  ;;  %v975_v55 = vand.u32 2147483647, %v974_v28  ;;  %v988_v13 = vadd.s32 3, %v984_v36  ;;  %v1111_v32 = vor.u32 8388608, %v1110_v56 }
 0x148   : > { %v789_v3 = vsel %vm782_vm1, %v785_v2, %v788_v58  ;;  %v1118_v48 = vsub.s32 32, %v1117_v35  ;;  %v3153_v23 = vshrl.u32 %v852_v60, 30  ;;  %v1120_v29 = vshll.u32 %v2565_v22, %v1117_v35 }
 0x149   : > { %v790_v57 = vsel %vm779_vm6, nan, %v789_v3  ;;  %v978_v18 = vmul.f32 %v977_v5, %v975_v55  ;;  %v3157_v40 = vadd.f32 %v421_v16, %v2744_v61  ;;  %v1123_v8 = vshll.u32 %v4035_v62, %v1117_v35 }
 0x14a   : > { %2145 = vst [vmem:[%s3073_s29 + $0x10] sm:$0xff] %v790_v57  ;;  %v1121_v50 = vshrl.u32 %v4035_v62, %v1118_v48  ;;  %v1124_v20 = vshrl.u32 %v4036_v54, %v1118_v48  ;;  %v854_v37 = vshll.u32 %v3153_v23, 30  ;;  %v1126_v17 = vshll.u32 %v4036_v54, %v1117_v35 }
 0x14b   : > { %v979_v27 = vxor.u32 2147483648, %v978_v18  ;;  %v1127_v31 = vshrl.u32 %v2568_v33, %v1118_v48  ;;  %v1130_v59 = vshrl.u32 %v2569_v41, %v1118_v48  ;;  %v1116_v61 = vshrl.u32 %v1115_v19, 5 }
 0x14c   : > { %v1122_v12 = vor.u32 %v1121_v50, %v1120_v29  ;;  %v1129_v28 = vshll.u32 %v2568_v33, %v1117_v35  ;;  %v3172_v56 = vsub.s32 %v851_v44, %v854_v37  ;;  %v1125_v58 = vor.u32 %v1124_v20, %v1123_v8 }
 0x14d   : > { %v980_v63 = vsel %vm897_vm11, %v979_v27, %v978_v18  ;;  %v1128_v36 = vor.u32 %v1127_v31, %v1126_v17  ;;  %v1132_v55 = vshll.u32 %v2569_v41, %v1117_v35  ;;  %v1133_v5 = vshrl.u32 %v4037_v49, %v1118_v48 }
 0x14e   : > { %v983_v26 = vsel %vm3114_vm15, %v2789_v9, %v980_v63  ;;  %v1131_v2 = vor.u32 %v1130_v59, %v1129_v28  ;;  %v857_v19 = vsub.s32 0, %v3172_v56  ;;  %v3177_v16 = vand.u32 3, %v988_v13 }
 0x14f   : > { %2448 = vcosq.f32 %v983_v26  ;;  %v1134_v3 = vor.u32 %v1133_v5, %v1132_v55  ;;  %vm1138_vm7 = vcmp.lt.s32.totalorder %v1116_v61, 4  ;;  %v1002_v52 = vand.u32 2139095040, %v3157_v40 }
 0x150   : > { %2450 = vsinq.f32 %v983_v26  ;;  %v2260_v44 = vmin.u32 %v857_v19, %v3172_v56  ;;  %v1119_v60 = vshrl.u32 %v2565_v22, %v1118_v48  ;;  %vm1135_vm8 = vcmp.lt.s32.totalorder %v1116_v61, 1 }
 0x151   : > { %v1140_v57 = vsel %vm1138_vm7, %v1128_v36, 2102212464  ;;  %vm1136_vm10 = vcmp.lt.s32.totalorder %v1116_v61, 2  ;;  %v1143_v35 = vsel %vm1135_vm8, %v1122_v12, %v1125_v58  ;;  %v1144_v18 = vsel %vm1138_vm7, %v1131_v2, 920167782 }
 0x152   : > { %v1151_v29 = vshll.u32 %v1111_v32, 8  ;;  %vm793_vm9 = vcmp.lt.s32.totalorder %v2973_v21, 0  ;;  %v859_v13 = vclz %v2260_v44  ;;  %vm1137_vm11 = vcmp.lt.s32.totalorder %v1116_v61, 3 }
 0x153   : > { %v1139_v27 = vsel %vm1135_vm8, %v1119_v60, %v1122_v12  ;;  %v1147_v50 = vsel %vm1135_vm8, %v1125_v58, %v1128_v36  ;;  %v1141_v8 = vsel %vm1137_vm11, %v1125_v58, %v1140_v57  ;;  %v1145_v20 = vsel %vm1137_vm11, %v1128_v36, %v1144_v18 }
 0x154   : > { %v1148_v37 = vsel %vm1138_vm7, %v1134_v3, 1326507024  ;;  %v1003_v17 = vshrl.u32 %v1002_v52, 23  ;;  %v2261_v48 = vadd.s32 4294967294, %v859_v13  ;;  %v1146_v31 = vsel %vm1136_vm10, %v1143_v35, %v1145_v20 }
 0x155   : > { %v1149_v59 = vsel %vm1137_vm11, %v1131_v2, %v1148_v37  ;;  %v999_v63 = vand.u32 2147483647, %v3157_v40  ;;  %v3189_v32 = vmul.u32.u64.low %v1151_v29, %v1146_v31  ;;  %v3190_v26 = vmul.u32.u64.high %v1151_v29, %v1146_v31, %v3189_v32 }
 0x156   : > { %v1150_v28 = vsel %vm1136_vm10, %v1147_v50, %v1149_v59  ;;  %v2267_v55 = vadd.s32 4294967169, %v1003_v17  ;;  %vm2262_vm12 = vcmp.lt.s32.totalorder %v2261_v48, 0  ;;  %v1142_v12 = vsel %vm1136_vm10, %v1139_v27, %v1141_v8  ;;  %v433_v50 = vpop.permute.xlu0 %432 }
 0x157   : > { %v3194_v58 = vmul.u32.u64.low %v1151_v29, %v1150_v28  ;;  %v3195_v36 = vmul.u32.u64.high %v1151_v29, %v1150_v28, %v3194_v58  ;;  %vm987_vm13 = vweird.f32 %v2789_v9  ;;  %vm3200_vm14 = vcmp.le.f32.partialorder %v791_v0, 0.7853982 }
 0x158   : > { %v862_v5 = vsel %vm2262_vm12, 0, %v2261_v48  ;;  %v877_v19 = vsub.s32 4, %v3153_v23  ;;  %v1009_v3 = vadd.s32 1, %v2267_v55  ;;  %vm994_vm15 = vcmp.eq.s32.totalorder %v3177_v16, 2 }
 0x159   : > { %v847_v61 = vadd.s32 %v3120_v51, %v3128_v4  ;;  %v863_v52 = vsub.s32 32, %v862_v5  ;;  %v867_v44 = vsub.s32 4294967266, %v862_v5  ;;  %v1158_v60 = vmul.u32 %v1151_v29, %v1142_v12 }
 0x15a   : > { %v1161_v57 = vadd.s32 1, %v3190_v26  ;;  %v1006_v0 = vand.u32 8388607, %v999_v63  ;;  %vm1010_vm0 = vcmp.gt.s32.totalorder %v1009_v3, 0  ;;  %v864_v18 = vshll.u32 %v3172_v56, %v862_v5 }
 0x15b   : > { %v865_v13 = vshrl.u32 %v847_v61, %v863_v52  ;;  %v868_v27 = vadd.s32 127, %v867_v44  ;;  %vm1160_vm1 = vc.u32 %v3195_v36, %v3189_v32  ;;  %v878_v4 = vsel %vm793_vm9, %v877_v19, %v3153_v23 }
 0x15c   : > { %v2449_v35 = vpop.eup %2448  ;;  %v1162_v29 = vsel %vm1160_vm1, %v1161_v57, %v3190_v26  ;;  %v1011_v20 = vsel %vm1010_vm0, %v1009_v3, 0  ;;  %vm991_vm2 = vcmp.eq.s32.totalorder %v3177_v16, 0  ;;  %v3222_v28 = vadd.f32 %v433_v50, %v2752_v7 }
 0x15d   : > { %v2451_v8 = vpop.eup %2450  ;;  %v995_v51 = vxor.u32 2147483648, %v2449_v35  ;;  %v866_v17 = vor.u32 %v865_v13, %v864_v18  ;;  %v869_v48 = vshll.u32 %v868_v27, 23  ;;  %v1163_v31 = vadd.s32 %v1162_v29, %v1158_v60 }
 0x15e   : > { %v992_v37 = vxor.u32 2147483648, %v2451_v8  ;;  %v1013_v59 = vand.u32 31, %v1011_v20  ;;  %vm990_vm3 = vcmp.lt.s32.totalorder %v3177_v16, 2  ;;  %v880_v58 = vsel %vm3200_vm14, 0, %v878_v4 }
 0x15f   : > { %v996_v56 = vsel %vm994_vm15, %v995_v51, %v2451_v8  ;;  %v870_v55 = vor.u32 4788187, %v869_v48  ;;  %v1164_v26 = vadd.s32 536870912, %v1163_v31  ;;  %v1007_v5 = vor.u32 8388608, %v1006_v0 }
 0x160   : > { %v993_v23 = vsel %vm991_vm2, %v2449_v35, %v992_v37  ;;  %v1014_v19 = vsub.s32 32, %v1013_v59  ;;  %v873_v52 = vcvt.s32.f32 %v866_v17  ;;  %v1314_v57 = vand.u32 2139095040, %v3222_v28 }
 0x161   : > { %v997_v12 = vsel %vm990_vm3, %v993_v23, %v996_v56  ;;  %v871_v61 = vand.u32 2147483647, %v870_v55  ;;  %v3229_v44 = vshrl.u32 %v1164_v26, 30  ;;  %v1016_v18 = vshll.u32 %v2565_v22, %v1013_v59 }
 0x162   : > { %v998_v3 = vsel %vm987_vm13, nan, %v997_v12  ;;  %v1017_v7 = vshrl.u32 %v4035_v62, %v1014_v19  ;;  %v1020_v16 = vshrl.u32 %v4036_v54, %v1014_v19  ;;  %v1023_v60 = vshrl.u32 %v2568_v33, %v1014_v19 }
 0x163   : > { %2147 = vst [vmem:[%s3073_s29 + $0x20] sm:$0xff] %v998_v3  ;;  %v874_v35 = vmul.f32 %v873_v52, %v871_v61  ;;  %v1166_v0 = vshll.u32 %v3229_v44, 30  ;;  %v1019_v9 = vshll.u32 %v4035_v62, %v1013_v59  ;;  %v1012_v13 = vshrl.u32 %v1011_v20, 5 }
 0x164   : > { %v1022_v27 = vshll.u32 %v4036_v54, %v1013_v59  ;;  %v1025_v50 = vshll.u32 %v2568_v33, %v1013_v59  ;;  %v1026_v8 = vshrl.u32 %v2569_v41, %v1014_v19  ;;  %v1018_v29 = vor.u32 %v1017_v7, %v1016_v18 }
 0x165   : > { %v875_v51 = vxor.u32 2147483648, %v874_v35  ;;  %v3242_v4 = vsub.s32 %v1163_v31, %v1166_v0  ;;  %v1021_v37 = vor.u32 %v1020_v16, %v1019_v9  ;;  %v1028_v56 = vshll.u32 %v2569_v41, %v1013_v59 }
 0x166   : > { %v1024_v17 = vor.u32 %v1023_v60, %v1022_v27  ;;  %v1027_v48 = vor.u32 %v1026_v8, %v1025_v50  ;;  %v1029_v23 = vshrl.u32 %v4037_v49, %v1014_v19  ;;  %v884_v55 = vadd.s32 3, %v880_v58 }
 0x167   : > { %v876_v20 = vsel %vm793_vm9, %v875_v51, %v874_v35  ;;  %v1169_v26 = vsub.s32 0, %v3242_v4  ;;  %v1047_v12 = vshll.u32 %v1007_v5, 8  ;;  %vm1105_vm4 = vcmp.lt.s32.totalorder %v3079_v45, 0 }
 0x168   : > { %v879_v31 = vsel %vm3200_vm14, %v2973_v21, %v876_v20  ;;  %v1015_v3 = vshrl.u32 %v2565_v22, %v1014_v19  ;;  %v1030_v61 = vor.u32 %v1029_v23, %v1028_v56  ;;  %v1315_v52 = vshrl.u32 %v1314_v57, 23 }
 0x169   : > { %2452 = vcosq.f32 %v879_v31  ;;  %v2272_v59 = vmin.u32 %v1169_v26, %v3242_v4  ;;  %vm1031_vm5 = vcmp.lt.s32.totalorder %v1012_v13, 1  ;;  %vm1034_vm6 = vcmp.lt.s32.totalorder %v1012_v13, 4 }
 0x16a   : > { %2454 = vsinq.f32 %v879_v31  ;;  %v1036_v58 = vsel %vm1034_vm6, %v1024_v17, 2102212464  ;;  %v1039_v7 = vsel %vm1031_vm5, %v1018_v29, %v1021_v37  ;;  %v1040_v16 = vsel %vm1034_vm6, %v1027_v48, 920167782 }
 0x16b   : > { %vm3257_vm7 = vcmp.le.f32.partialorder %v1103_v53, 0.7853982  ;;  %v1171_v5 = vclz %v2272_v59  ;;  %vm1032_vm8 = vcmp.lt.s32.totalorder %v1012_v13, 2  ;;  %vm1033_vm10 = vcmp.lt.s32.totalorder %v1012_v13, 3 }
 0x16c   : > { %v1035_v19 = vsel %vm1031_vm5, %v1015_v3, %v1018_v29  ;;  %v1037_v60 = vsel %vm1033_vm10, %v1021_v37, %v1036_v58  ;;  %v1041_v57 = vsel %vm1033_vm10, %v1024_v17, %v1040_v16  ;;  %v1043_v35 = vsel %vm1031_vm5, %v1021_v37, %v1024_v17 }
 0x16d   : > { %v1044_v0 = vsel %vm1034_vm6, %v1030_v61, 1326507024  ;;  %v2273_v18 = vadd.s32 4294967294, %v1171_v5  ;;  %v1189_v9 = vsub.s32 4, %v3229_v44  ;;  %v1042_v27 = vsel %vm1032_vm8, %v1039_v7, %v1041_v57 }
 0x16e   : > { %v1045_v50 = vsel %vm1033_vm10, %v1027_v48, %v1044_v0  ;;  %v1038_v8 = vsel %vm1032_vm8, %v1035_v19, %v1037_v60  ;;  %v3262_v56 = vmul.u32.u64.low %v1047_v12, %v1042_v27  ;;  %v3263_v53 = vmul.u32.u64.high %v1047_v12, %v1042_v27, %v3262_v56  ;;  %v429_v0 = vpop.permute.xlu1 %428 }
 0x16f   : > { %v1046_v51 = vsel %vm1032_vm8, %v1043_v35, %v1045_v50  ;;  %vm2274_vm9 = vcmp.lt.s32.totalorder %v2273_v18, 0  ;;  %v2279_v13 = vadd.s32 4294967169, %v1315_v52  ;;  %v885_v29 = vand.u32 3, %v884_v55 }
 0x170   : > { %v3265_v23 = vmul.u32.u64.low %v1047_v12, %v1046_v51  ;;  %v3266_v20 = vmul.u32.u64.high %v1047_v12, %v1046_v51, %v3265_v23  ;;  %v1159_v37 = vadd.s32 %v3189_v32, %v3195_v36  ;;  %v1174_v17 = vsel %vm2274_vm9, 0, %v2273_v18 }
 0x171   : > { %v390_v26 = vadd.f32 %v2746_v1, %v2710_v30  ;;  %v1175_v31 = vsub.s32 32, %v1174_v17  ;;  %v1179_v48 = vsub.s32 4294967266, %v1174_v17  ;;  %v1190_v3 = vsel %vm1105_vm4, %v1189_v9, %v3229_v44 }
 0x172   : > { %v1321_v61 = vadd.s32 1, %v2279_v13  ;;  %v1054_v59 = vmul.u32 %v1047_v12, %v1038_v8  ;;  %v1057_v58 = vadd.s32 1, %v3263_v53  ;;  %v1311_v52 = vand.u32 2147483647, %v3222_v28 }
 0x173   : > { %v3279_v55 = vadd.f32 %v2754_v10, %v2721_v39  ;;  %v1176_v32 = vshll.u32 %v3242_v4, %v1174_v17  ;;  %v1177_v36 = vshrl.u32 %v1159_v37, %v1175_v31  ;;  %v1180_v30 = vadd.s32 127, %v1179_v48 }
 0x174   : > { %vm1056_vm11 = vc.u32 %v3266_v20, %v3262_v56  ;;  %v1192_v1 = vsel %vm3257_vm7, 0, %v1190_v3  ;;  %vm1322_vm12 = vcmp.gt.s32.totalorder %v1321_v61, 0  ;;  %vm883_vm13 = vweird.f32 %v2973_v21 }
 0x175   : > { %v1058_v44 = vsel %vm1056_vm11, %v1057_v58, %v3263_v53  ;;  %v1178_v12 = vor.u32 %v1177_v36, %v1176_v32  ;;  %v1181_v7 = vshll.u32 %v1180_v30, 23  ;;  %v1323_v5 = vsel %vm1322_vm12, %v1321_v61, 0 }
 0x176   : > { %v1059_v16 = vadd.s32 %v1058_v44, %v1054_v59  ;;  %v2453_v19 = vpop.eup %2452  ;;  %vm886_vm14 = vcmp.lt.s32.totalorder %v885_v29, 2  ;;  %v1318_v39 = vand.u32 8388607, %v1311_v52  ;;  %v1325_v10 = vand.u32 31, %v1323_v5 }
 0x177   : > { %v2455_v4 = vpop.eup %2454  ;;  %vm887_vm15 = vcmp.eq.s32.totalorder %v885_v29, 0  ;;  %v891_v60 = vxor.u32 2147483648, %v2453_v19  ;;  %v1182_v57 = vor.u32 4788187, %v1181_v7  ;;  %vm890_vm0 = vcmp.eq.s32.totalorder %v885_v29, 2 }
 0x178   : > { %v1060_v35 = vadd.s32 536870912, %v1059_v16  ;;  %v888_v18 = vxor.u32 2147483648, %v2455_v4  ;;  %v3289_v9 = vadd.s32 3, %v1192_v1  ;;  %v1326_v27 = vsub.s32 32, %v1325_v10 }
 0x179   : > { %v892_v50 = vsel %vm890_vm0, %v891_v60, %v2455_v4  ;;  %v1183_v8 = vand.u32 2147483647, %v1182_v57  ;;  %v1185_v51 = vcvt.s32.f32 %v1178_v12  ;;  %v1319_v13 = vor.u32 8388608, %v1318_v39 }
 0x17a   : > { %v1061_v53 = vshrl.u32 %v1060_v35, 30  ;;  %v889_v23 = vsel %vm887_vm15, %v2453_v19, %v888_v18  ;;  %v1329_v37 = vshrl.u32 %v4035_v62, %v1326_v27  ;;  %v3292_v17 = vadd.f32 %v429_v0, %v390_v26 }
 0x17b   : > { %v893_v31 = vsel %vm886_vm14, %v889_v23, %v892_v50  ;;  %v1186_v48 = vmul.f32 %v1185_v51, %v1183_v8  ;;  %v3296_v3 = vadd.s32 %v3262_v56, %v3266_v20  ;;  %v1328_v58 = vshll.u32 %v2565_v22, %v1325_v10 }
 0x17c   : > { %v1062_v61 = vshll.u32 %v1061_v53, 30  ;;  %v894_v59 = vsel %vm883_vm13, nan, %v893_v31  ;;  %v1332_v32 = vshrl.u32 %v4036_v54, %v1326_v27  ;;  %v1335_v36 = vshrl.u32 %v2568_v33, %v1326_v27 }
 0x17d   : > { %2146 = vst [vmem:[%s3073_s29 + $0x18] sm:$0xff] %v894_v59  ;;  %v1187_v30 = vxor.u32 2147483648, %v1186_v48  ;;  %v1324_v29 = vshrl.u32 %v1323_v5, 5  ;;  %v1331_v1 = vshll.u32 %v4035_v62, %v1325_v10  ;;  %v1330_v44 = vor.u32 %v1329_v37, %v1328_v58 }
 0x17e   : > { %v3304_v26 = vsub.s32 %v1059_v16, %v1062_v61  ;;  %v1334_v56 = vshll.u32 %v4036_v54, %v1325_v10  ;;  %v1337_v20 = vshll.u32 %v2568_v33, %v1325_v10  ;;  %v1338_v21 = vshrl.u32 %v2569_v41, %v1326_v27 }
 0x17f   : > { %v1188_v12 = vsel %vm1105_vm4, %v1187_v30, %v1186_v48  ;;  %vm1001_vm1 = vcmp.lt.s32.totalorder %v3157_v40, 0  ;;  %v1340_v16 = vshll.u32 %v2569_v41, %v1325_v10  ;;  %v1341_v5 = vshrl.u32 %v4037_v49, %v1326_v27 }
 0x180   : > { %v1065_v7 = vsub.s32 0, %v3304_v26  ;;  %v1191_v19 = vsel %vm3257_vm7, %v3079_v45, %v1188_v12  ;;  %v1333_v39 = vor.u32 %v1332_v32, %v1331_v1  ;;  %v1336_v4 = vor.u32 %v1335_v36, %v1334_v56 }
 0x181   : > { %v1339_v60 = vor.u32 %v1338_v21, %v1337_v20  ;;  %2456 = vcosq.f32 %v1191_v19  ;;  %v1342_v35 = vor.u32 %v1341_v5, %v1340_v16  ;;  %v1359_v0 = vshll.u32 %v1319_v13, 8 }
 0x182   : > { %v2268_v57 = vmin.u32 %v1065_v7, %v3304_v26  ;;  %2458 = vsinq.f32 %v1191_v19  ;;  %v1085_v18 = vsub.s32 4, %v1061_v53  ;;  %v1327_v50 = vshrl.u32 %v2565_v22, %v1326_v27 }
 0x183   : > { %vm1343_vm2 = vcmp.lt.s32.totalorder %v1324_v29, 1  ;;  %vm1344_vm3 = vcmp.lt.s32.totalorder %v1324_v29, 2  ;;  %vm1345_vm4 = vcmp.lt.s32.totalorder %v1324_v29, 3  ;;  %vm1346_vm5 = vcmp.lt.s32.totalorder %v1324_v29, 4 }
 0x184   : > { %v1067_v10 = vclz %v2268_v57  ;;  %v1348_v8 = vsel %vm1346_vm5, %v1336_v4, 2102212464  ;;  %v1351_v2 = vsel %vm1343_vm2, %v1330_v44, %v1333_v39  ;;  %v1352_v51 = vsel %vm1346_vm5, %v1339_v60, 920167782 }
 0x185   : > { %v1355_v23 = vsel %vm1343_vm2, %v1333_v39, %v1336_v4  ;;  %v1347_v31 = vsel %vm1343_vm2, %v1327_v50, %v1330_v44  ;;  %v1353_v48 = vsel %vm1345_vm4, %v1336_v4, %v1352_v51  ;;  %v1356_v61 = vsel %vm1346_vm5, %v1342_v35, 1326507024 }
 0x186   : > { %v2269_v37 = vadd.s32 4294967294, %v1067_v10  ;;  %v1349_v59 = vsel %vm1345_vm4, %v1333_v39, %v1348_v8  ;;  %v1354_v13 = vsel %vm1344_vm3, %v1351_v2, %v1353_v48  ;;  %v1357_v58 = vsel %vm1345_vm4, %v1339_v60, %v1356_v61 }
 0x187   : > { %v1210_v32 = vand.u32 2139095040, %v3292_v17  ;;  %v1358_v27 = vsel %vm1344_vm3, %v1355_v23, %v1357_v58  ;;  %v3324_v36 = vmul.u32.u64.low %v1359_v0, %v1354_v13  ;;  %v3325_v30 = vmul.u32.u64.high %v1359_v0, %v1354_v13, %v3324_v36 }
 0x188   : > { %vm2270_vm6 = vcmp.lt.s32.totalorder %v2269_v37, 0  ;;  %v1086_v56 = vsel %vm1001_vm1, %v1085_v18, %v1061_v53  ;;  %v3330_v44 = vmul.u32.u64.low %v1359_v0, %v1358_v27  ;;  %v3331_v20 = vmul.u32.u64.high %v1359_v0, %v1358_v27, %v3330_v44 }
 0x189   : > { %v1070_v1 = vsel %vm2270_vm6, 0, %v2269_v37  ;;  %v1350_v7 = vsel %vm1344_vm3, %v1347_v31, %v1349_v59  ;;  %v1211_v16 = vshrl.u32 %v1210_v32, 23  ;;  %v1197_v5 = vand.u32 3, %v3289_v9  ;;  %v441_v31 = vpop.permute.xlu0 %440 }
 0x18a   : > { %v1071_v21 = vsub.s32 32, %v1070_v1  ;;  %v1075_v12 = vsub.s32 4294967266, %v1070_v1  ;;  %vm3337_vm7 = vcmp.le.f32.partialorder %v999_v63, 0.7853982  ;;  %v1072_v39 = vshll.u32 %v3304_v26, %v1070_v1 }
 0x18b   : > { %v3344_v53 = vadd.f32 %v2750_v6, %v2714_v34  ;;  %v1369_v29 = vadd.s32 1, %v3325_v30  ;;  %v2275_v57 = vadd.s32 4294967169, %v1211_v16  ;;  %v1088_v9 = vsel %vm3337_vm7, 0, %v1086_v56 }
 0x18c   : > { %v1073_v4 = vshrl.u32 %v3296_v3, %v1071_v21  ;;  %v1076_v60 = vadd.s32 127, %v1075_v12  ;;  %v1366_v35 = vmul.u32 %v1359_v0, %v1350_v7  ;;  %vm1368_vm8 = vc.u32 %v3331_v20, %v3324_v36 }
 0x18d   : > { %v1370_v26 = vsel %vm1368_vm8, %v1369_v29, %v3325_v30  ;;  %v1217_v50 = vadd.s32 1, %v2275_v57  ;;  %vm1195_vm10 = vweird.f32 %v3079_v45  ;;  %vm1199_vm9 = vcmp.eq.s32.totalorder %v1197_v5, 0 }
 0x18e   : > { %v1074_v63 = vor.u32 %v1073_v4, %v1072_v39  ;;  %v1077_v18 = vshll.u32 %v1076_v60, 23  ;;  %v2457_v34 = vpop.eup %2456  ;;  %v1371_v6 = vadd.s32 %v1370_v26, %v1366_v35  ;;  %v1207_v3 = vand.u32 2147483647, %v3292_v17 }
 0x18f   : > { %v2459_v10 = vpop.eup %2458  ;;  %vm1202_vm11 = vcmp.eq.s32.totalorder %v1197_v5, 2  ;;  %v1203_v8 = vxor.u32 2147483648, %v2457_v34  ;;  %vm1218_vm12 = vcmp.gt.s32.totalorder %v1217_v50, 0  ;;  %v1092_v51 = vadd.s32 3, %v1088_v9 }
 0x190   : > { %v1078_v2 = vor.u32 4788187, %v1077_v18  ;;  %v1200_v0 = vxor.u32 2147483648, %v2459_v10  ;;  %v1372_v23 = vadd.s32 536870912, %v1371_v6  ;;  %v1219_v37 = vsel %vm1218_vm12, %v1217_v50, 0 }
 0x191   : > { %v1204_v48 = vsel %vm1202_vm11, %v1203_v8, %v2459_v10  ;;  %v1081_v59 = vcvt.s32.f32 %v1074_v63  ;;  %v1221_v13 = vand.u32 31, %v1219_v37  ;;  %vm1198_vm13 = vcmp.lt.s32.totalorder %v1197_v5, 2 }
 0x192   : > { %v1079_v61 = vand.u32 2147483647, %v1078_v2  ;;  %v1201_v58 = vsel %vm1199_vm9, %v2457_v34, %v1200_v0  ;;  %v3356_v32 = vshrl.u32 %v1372_v23, 30  ;;  %v1214_v27 = vand.u32 8388607, %v1207_v3 }
 0x193   : > { %v1205_v30 = vsel %vm1198_vm13, %v1201_v58, %v1204_v48  ;;  %v1222_v56 = vsub.s32 32, %v1221_v13  ;;  %v3361_v44 = vadd.f32 %v441_v31, %v3279_v55  ;;  %v3367_v16 = vand.u32 3, %v1092_v51 }
 0x194   : > { %v1082_v1 = vmul.f32 %v1081_v59, %v1079_v61  ;;  %v1206_v21 = vsel %vm1195_vm10, nan, %v1205_v30  ;;  %v1374_v12 = vshll.u32 %v3356_v32, 30  ;;  %v1215_v60 = vor.u32 8388608, %v1214_v27 }
 0x195   : > { %2149 = vst [vmem:[%s3073_s29 + $0x30] sm:$0xff] %v1206_v21  ;;  %v1225_v5 = vshrl.u32 %v4035_v62, %v1222_v56  ;;  %v1228_v39 = vshrl.u32 %v4036_v54, %v1222_v56  ;;  %v1224_v29 = vshll.u32 %v2565_v22, %v1221_v13  ;;  %v1231_v55 = vshrl.u32 %v2568_v33, %v1222_v56 }
 0x196   : > { %v1083_v7 = vxor.u32 2147483648, %v1082_v1  ;;  %v3371_v4 = vsub.s32 %v1371_v6, %v1374_v12  ;;  %v1220_v57 = vshrl.u32 %v1219_v37, 5  ;;  %v1227_v9 = vshll.u32 %v4035_v62, %v1221_v13 }
 0x197   : > { %v1522_v35 = vand.u32 2139095040, %v3361_v44  ;;  %v1226_v26 = vor.u32 %v1225_v5, %v1224_v29  ;;  %v1230_v50 = vshll.u32 %v4036_v54, %v1221_v13  ;;  %v1233_v6 = vshll.u32 %v2568_v33, %v1221_v13 }
 0x198   : > { %v1084_v45 = vsel %vm1001_vm1, %v1083_v7, %v1082_v1  ;;  %v1377_v18 = vsub.s32 0, %v3371_v4  ;;  %v1229_v34 = vor.u32 %v1228_v39, %v1227_v9  ;;  %v1234_v10 = vshrl.u32 %v2569_v41, %v1222_v56 }
 0x199   : > { %v1087_v63 = vsel %vm3337_vm7, %v3157_v40, %v1084_v45  ;;  %v1232_v2 = vor.u32 %v1231_v55, %v1230_v50  ;;  %v1237_v0 = vshrl.u32 %v4037_v49, %v1222_v56  ;;  %v1236_v19 = vshll.u32 %v2569_v41, %v1221_v13 }
 0x19a   : > { %2460 = vcosq.f32 %v1087_v63  ;;  %v2280_v8 = vmin.u32 %v1377_v18, %v3371_v4  ;;  %v1235_v51 = vor.u32 %v1234_v10, %v1233_v6  ;;  %v1255_v23 = vshll.u32 %v1215_v60, 8 }
 0x19b   : > { %2462 = vsinq.f32 %v1087_v63  ;;  %v1523_v37 = vshrl.u32 %v1522_v35, 23  ;;  %v1223_v48 = vshrl.u32 %v2565_v22, %v1222_v56  ;;  %vm1239_vm14 = vcmp.lt.s32.totalorder %v1220_v57, 1 }
 0x19c   : > { %v1379_v31 = vclz %v2280_v8  ;;  %vm1240_vm15 = vcmp.lt.s32.totalorder %v1220_v57, 2  ;;  %v1238_v61 = vor.u32 %v1237_v0, %v1236_v19  ;;  %vm1241_vm0 = vcmp.lt.s32.totalorder %v1220_v57, 3 }
 0x19d   : > { %vm1242_vm1 = vcmp.lt.s32.totalorder %v1220_v57, 4  ;;  %v1247_v59 = vsel %vm1239_vm14, %v1226_v26, %v1229_v34  ;;  %vm1313_vm2 = vcmp.lt.s32.totalorder %v3222_v28, 0  ;;  %v1251_v1 = vsel %vm1239_vm14, %v1229_v34, %v1232_v2 }
 0x19e   : > { %v2281_v58 = vadd.s32 4294967294, %v1379_v31  ;;  %v1244_v27 = vsel %vm1242_vm1, %v1232_v2, 2102212464  ;;  %v1248_v30 = vsel %vm1242_vm1, %v1235_v51, 920167782  ;;  %v1243_v21 = vsel %vm1239_vm14, %v1223_v48, %v1226_v26 }
 0x19f   : > { %v1249_v12 = vsel %vm1241_vm0, %v1232_v2, %v1248_v30  ;;  %v1252_v13 = vsel %vm1242_vm1, %v1238_v61, 1326507024  ;;  %v2287_v7 = vadd.s32 4294967169, %v1523_v37  ;;  %v1245_v5 = vsel %vm1241_vm0, %v1229_v34, %v1244_v27 }
 0x1a0   : > { %vm2282_vm3 = vcmp.lt.s32.totalorder %v2281_v58, 0  ;;  %v1250_v56 = vsel %vm1240_vm15, %v1247_v59, %v1249_v12  ;;  %v1253_v39 = vsel %vm1241_vm0, %v1235_v51, %v1252_v13  ;;  %vm3394_vm4 = vcmp.le.f32.partialorder %v1311_v52, 0.7853982 }
 0x1a1   : > { %v1382_v29 = vsel %vm2282_vm3, 0, %v2281_v58  ;;  %v1254_v55 = vsel %vm1240_vm15, %v1251_v1, %v1253_v39  ;;  %v3399_v45 = vmul.u32.u64.low %v1255_v23, %v1250_v56  ;;  %v3400_v9 = vmul.u32.u64.high %v1255_v23, %v1250_v56, %v3399_v45 }
 0x1a2   : > { %vm1094_vm5 = vcmp.lt.s32.totalorder %v3367_v16, 2  ;;  %v1367_v35 = vadd.s32 %v3324_v36, %v3331_v20  ;;  %v1383_v63 = vsub.s32 32, %v1382_v29  ;;  %v1387_v18 = vsub.s32 4294967266, %v1382_v29 }
 0x1a3   : > { %vm1091_vm6 = vweird.f32 %v3157_v40  ;;  %v1397_v52 = vsub.s32 4, %v3356_v32  ;;  %v3408_v26 = vmul.u32.u64.low %v1255_v23, %v1254_v55  ;;  %v3409_v50 = vmul.u32.u64.high %v1255_v23, %v1254_v55, %v3408_v26 }
 0x1a4   : > { %v1529_v34 = vadd.s32 1, %v2287_v7  ;;  %v1384_v6 = vshll.u32 %v3371_v4, %v1382_v29  ;;  %v1385_v10 = vshrl.u32 %v1367_v35, %v1383_v63  ;;  %v1388_v8 = vadd.s32 127, %v1387_v18 }
 0x1a5   : > { %v1246_v2 = vsel %vm1240_vm15, %v1243_v21, %v1245_v5  ;;  %v1265_v0 = vadd.s32 1, %v3400_v9  ;;  %v1519_v36 = vand.u32 2147483647, %v3361_v44  ;;  %v3417_v20 = vadd.f32 %v2758_v14, %v2727_v43 }
 0x1a6   : > { %vm1530_vm7 = vcmp.gt.s32.totalorder %v1529_v34, 0  ;;  %vm1095_vm8 = vcmp.eq.s32.totalorder %v3367_v16, 0  ;;  %v1386_v19 = vor.u32 %v1385_v10, %v1384_v6  ;;  %v1389_v37 = vshll.u32 %v1388_v8, 23 }
 0x1a7   : > { %v2461_v51 = vpop.eup %2460  ;;  %v1531_v31 = vsel %vm1530_vm7, %v1529_v34, 0  ;;  %v1398_v57 = vsel %vm1313_vm2, %v1397_v52, %v3356_v32  ;;  %v1262_v61 = vmul.u32 %v1255_v23, %v1246_v2  ;;  %vm1264_vm10 = vc.u32 %v3409_v50, %v3399_v45  ;;  %v437_v2 = vpop.permute.xlu1 %436 }
 0x1a8   : > { %v2463_v4 = vpop.eup %2462  ;;  %v1099_v48 = vxor.u32 2147483648, %v2461_v51  ;;  %vm1098_vm9 = vcmp.eq.s32.totalorder %v3367_v16, 2  ;;  %v1390_v43 = vor.u32 4788187, %v1389_v37  ;;  %v1266_v14 = vsel %vm1264_vm10, %v1265_v0, %v3400_v9 }
 0x1a9   : > { %v1096_v59 = vxor.u32 2147483648, %v2463_v4  ;;  %v1267_v27 = vadd.s32 %v1266_v14, %v1262_v61  ;;  %v1526_v30 = vand.u32 8388607, %v1519_v36  ;;  %v1533_v1 = vand.u32 31, %v1531_v31 }
 0x1aa   : > { %v1100_v58 = vsel %vm1098_vm9, %v1099_v48, %v2463_v4  ;;  %v1391_v23 = vand.u32 2147483647, %v1390_v43  ;;  %v1393_v21 = vcvt.s32.f32 %v1386_v19  ;;  %v1400_v12 = vsel %vm3394_vm4, 0, %v1398_v57 }
 0x1ab   : > { %v1097_v32 = vsel %vm1095_vm8, %v2461_v51, %v1096_v59  ;;  %v1268_v7 = vadd.s32 536870912, %v1267_v27  ;;  %v3435_v5 = vshrl.u32 %v1531_v31, 5  ;;  %v1534_v56 = vsub.s32 32, %v1533_v1 }
 0x1ac   : > { %v1101_v13 = vsel %vm1094_vm5, %v1097_v32, %v1100_v58  ;;  %v1394_v29 = vmul.f32 %v1393_v21, %v1391_v23  ;;  %v1536_v55 = vshll.u32 %v2565_v22, %v1533_v1  ;;  %v1539_v9 = vshll.u32 %v4035_v62, %v1533_v1 }
 0x1ad   : > { %v1102_v39 = vsel %vm1091_vm6, nan, %v1101_v13  ;;  %v3442_v35 = vshrl.u32 %v1268_v7, 30  ;;  %v1537_v63 = vshrl.u32 %v4035_v62, %v1534_v56  ;;  %v1540_v16 = vshrl.u32 %v4036_v54, %v1534_v56 }
 0x1ae   : > { %2148 = vst [vmem:[%s3073_s29 + $0x28] sm:$0xff] %v1102_v39  ;;  %v1542_v18 = vshll.u32 %v4036_v54, %v1533_v1  ;;  %v1395_v52 = vxor.u32 2147483648, %v1394_v29  ;;  %v1543_v26 = vshrl.u32 %v2568_v33, %v1534_v56  ;;  %v1545_v40 = vshll.u32 %v2568_v33, %v1533_v1 }
 0x1af   : > { %v1546_v34 = vshrl.u32 %v2569_v41, %v1534_v56  ;;  %v1404_v6 = vadd.s32 3, %v1400_v12  ;;  %v1270_v10 = vshll.u32 %v3442_v35, 30  ;;  %v1538_v8 = vor.u32 %v1537_v63, %v1536_v55 }
 0x1b0   : > { %v1396_v0 = vsel %vm1313_vm2, %v1395_v52, %v1394_v29  ;;  %v1541_v51 = vor.u32 %v1540_v16, %v1539_v9  ;;  %v1544_v19 = vor.u32 %v1543_v26, %v1542_v18  ;;  %v1548_v48 = vshll.u32 %v2569_v41, %v1533_v1 }
 0x1b1   : > { %v1547_v37 = vor.u32 %v1546_v34, %v1545_v40  ;;  %v1399_v31 = vsel %vm3394_vm4, %v3222_v28, %v1396_v0  ;;  %v3456_v4 = vsub.s32 %v1267_v27, %v1270_v10  ;;  %v1549_v57 = vshrl.u32 %v4037_v49, %v1534_v56 }
 0x1b2   : > { %2464 = vcosq.f32 %v1399_v31  ;;  %v1527_v61 = vor.u32 8388608, %v1526_v30  ;;  %vm1551_vm11 = vcmp.lt.s32.totalorder %v3435_v5, 1  ;;  %v3462_v59 = vadd.f32 %v437_v2, %v3344_v53 }
 0x1b3   : > { %2466 = vsinq.f32 %v1399_v31  ;;  %v1273_v43 = vsub.s32 0, %v3456_v4  ;;  %v1550_v14 = vor.u32 %v1549_v57, %v1548_v48  ;;  %vm1554_vm12 = vcmp.lt.s32.totalorder %v3435_v5, 4 }
 0x1b4   : > { %vm1552_vm13 = vcmp.lt.s32.totalorder %v3435_v5, 2  ;;  %vm1553_vm14 = vcmp.lt.s32.totalorder %v3435_v5, 3  ;;  %v1559_v60 = vsel %vm1551_vm11, %v1538_v8, %v1541_v51  ;;  %v1560_v58 = vsel %vm1554_vm12, %v1547_v37, 920167782 }
 0x1b5   : > { %v2276_v27 = vmin.u32 %v1273_v43, %v3456_v4  ;;  %v1535_v30 = vshrl.u32 %v2565_v22, %v1534_v56  ;;  %v1556_v53 = vsel %vm1554_vm12, %v1544_v19, 2102212464  ;;  %v1561_v1 = vsel %vm1553_vm14, %v1544_v19, %v1560_v58 }
 0x1b6   : > { %v1562_v32 = vsel %vm1552_vm13, %v1559_v60, %v1561_v1  ;;  %v1563_v23 = vsel %vm1551_vm11, %v1541_v51, %v1544_v19  ;;  %v1564_v21 = vsel %vm1554_vm12, %v1550_v14, 1326507024  ;;  %v1567_v12 = vshll.u32 %v1527_v61, 8  ;;  %v449_v60 = vpop.permute.xlu0 %448 }
 0x1b7   : > { %v1405_v13 = vand.u32 3, %v1404_v6  ;;  %v1275_v7 = vclz %v2276_v27  ;;  %v1555_v39 = vsel %vm1551_vm11, %v1535_v30, %v1538_v8  ;;  %v1557_v29 = vsel %vm1553_vm14, %v1541_v51, %v1556_v53 }
 0x1b8   : > { %v1565_v55 = vsel %vm1553_vm14, %v1547_v37, %v1564_v21  ;;  %v3478_v9 = vmul.u32.u64.low %v1567_v12, %v1562_v32  ;;  %v3479_v63 = vmul.u32.u64.high %v1567_v12, %v1562_v32, %v3478_v9  ;;  %vm3484_vm15 = vcmp.le.f32.partialorder %v1207_v3, 0.7853982 }
 0x1b9   : > { %v2277_v16 = vadd.s32 4294967294, %v1275_v7  ;;  %v1293_v18 = vsub.s32 4, %v3442_v35  ;;  %v1566_v52 = vsel %vm1552_vm13, %v1563_v23, %v1565_v55  ;;  %v1418_v26 = vand.u32 2139095040, %v3462_v59 }
 0x1ba   : > { %vm1209_vm0 = vcmp.lt.s32.totalorder %v3292_v17, 0  ;;  %v3493_v40 = vmul.u32.u64.low %v1567_v12, %v1566_v52  ;;  %v3494_v34 = vmul.u32.u64.high %v1567_v12, %v1566_v52, %v3493_v40  ;;  %v1415_v6 = vand.u32 2147483647, %v3462_v59 }
 0x1bb   : > { %vm1406_vm1 = vcmp.lt.s32.totalorder %v1405_v13, 2  ;;  %vm2278_vm2 = vcmp.lt.s32.totalorder %v2277_v16, 0  ;;  %v1558_v3 = vsel %vm1552_vm13, %v1555_v39, %v1557_v29  ;;  %v1419_v10 = vshrl.u32 %v1418_v26, 23 }
 0x1bc   : > { %v3501_v8 = vadd.f32 %v2756_v11, %v2718_v38  ;;  %v1263_v2 = vadd.s32 %v3399_v45, %v3409_v50  ;;  %v1278_v0 = vsel %vm2278_vm2, 0, %v2277_v16  ;;  %v1577_v51 = vadd.s32 1, %v3479_v63 }
 0x1bd   : > { %v3508_v19 = vadd.f32 %v2762_v24, %v2733_v47  ;;  %v1279_v37 = vsub.s32 32, %v1278_v0  ;;  %v1283_v31 = vsub.s32 4294967266, %v1278_v0  ;;  %v1294_v5 = vsel %vm1209_vm0, %v1293_v18, %v3442_v35 }
 0x1be   : > { %v2283_v48 = vadd.s32 4294967169, %v1419_v10  ;;  %v1280_v38 = vshll.u32 %v3456_v4, %v1278_v0  ;;  %v1574_v11 = vmul.u32 %v1567_v12, %v1558_v3  ;;  %vm1576_vm3 = vc.u32 %v3494_v34, %v3478_v9 }
 0x1bf   : > { %v1422_v45 = vand.u32 8388607, %v1415_v6  ;;  %v2465_v50 = vpop.eup %2464  ;;  %v1281_v57 = vshrl.u32 %v1263_v2, %v1279_v37  ;;  %v1284_v47 = vadd.s32 127, %v1283_v31  ;;  %v1578_v24 = vsel %vm1576_vm3, %v1577_v51, %v3479_v63 }
 0x1c0   : > { %v1425_v61 = vadd.s32 1, %v2283_v48  ;;  %v2467_v43 = vpop.eup %2466  ;;  %vm1407_vm4 = vcmp.eq.s32.totalorder %v1405_v13, 0  ;;  %vm1410_vm5 = vcmp.eq.s32.totalorder %v1405_v13, 2  ;;  %v1411_v35 = vxor.u32 2147483648, %v2465_v50 }
 0x1c1   : > { %v1579_v14 = vadd.s32 %v1578_v24, %v1574_v11  ;;  %v1408_v4 = vxor.u32 2147483648, %v2467_v43  ;;  %v1282_v58 = vor.u32 %v1281_v57, %v1280_v38  ;;  %v1285_v27 = vshll.u32 %v1284_v47, 23 }
 0x1c2   : > { %vm1426_vm6 = vcmp.gt.s32.totalorder %v1425_v61, 0  ;;  %v1412_v30 = vsel %vm1410_vm5, %v1411_v35, %v2467_v43  ;;  %v1296_v53 = vsel %vm3484_vm15, 0, %v1294_v5  ;;  %v1423_v12 = vor.u32 8388608, %v1422_v45 }
 0x1c3   : > { %v1580_v1 = vadd.s32 536870912, %v1579_v14  ;;  %v1427_v32 = vsel %vm1426_vm6, %v1425_v61, 0  ;;  %v1409_v23 = vsel %vm1407_vm4, %v2465_v50, %v1408_v4  ;;  %v1286_v21 = vor.u32 4788187, %v1285_v27 }
 0x1c4   : > { %v3522_v7 = vadd.f32 %v449_v60, %v3417_v20  ;;  %vm1403_vm7 = vweird.f32 %v3222_v28  ;;  %v1413_v39 = vsel %vm1406_vm1, %v1409_v23, %v1412_v30  ;;  %v1429_v55 = vand.u32 31, %v1427_v32 }
 0x1c5   : > { %v3526_v29 = vshrl.u32 %v1580_v1, 30  ;;  %v1414_v63 = vsel %vm1403_vm7, nan, %v1413_v39  ;;  %v1287_v16 = vand.u32 2147483647, %v1286_v21  ;;  %v1289_v18 = vcvt.s32.f32 %v1282_v58 }
 0x1c6   : > { %2151 = vst [vmem:[%s3073_s29 + $0x40] sm:$0xff] %v1414_v63  ;;  %v3529_v52 = vadd.s32 3, %v1296_v53  ;;  %v1430_v40 = vsub.s32 32, %v1429_v55  ;;  %v1575_v20 = vadd.s32 %v3478_v9, %v3494_v34  ;;  %v3534_v10 = vshll.u32 %v1423_v12, 8 }
 0x1c7   : > { %v1582_v26 = vshll.u32 %v3526_v29, 30  ;;  %v1290_v3 = vmul.f32 %v1289_v18, %v1287_v16  ;;  %v1730_v28 = vand.u32 2139095040, %v3522_v7  ;;  %v1428_v2 = vshrl.u32 %v1427_v32, 5 }
 0x1c8   : > { %v1432_v0 = vshll.u32 %v2565_v22, %v1429_v55  ;;  %v1433_v51 = vshrl.u32 %v4035_v62, %v1430_v40  ;;  %v1436_v31 = vshrl.u32 %v4036_v54, %v1430_v40  ;;  %v1438_v5 = vshll.u32 %v4036_v54, %v1429_v55 }
 0x1c9   : > { %v3537_v13 = vsub.s32 %v1579_v14, %v1582_v26  ;;  %v1291_v37 = vxor.u32 2147483648, %v1290_v3  ;;  %v1439_v48 = vshrl.u32 %v2568_v33, %v1430_v40  ;;  %v1435_v34 = vshll.u32 %v4035_v62, %v1429_v55 }
 0x1ca   : > { %v1441_v38 = vshll.u32 %v2568_v33, %v1429_v55  ;;  %v1442_v11 = vshrl.u32 %v2569_v41, %v1430_v40  ;;  %vm1521_vm8 = vcmp.lt.s32.totalorder %v3361_v44, 0  ;;  %v1434_v50 = vor.u32 %v1433_v51, %v1432_v0 }
 0x1cb   : > { %v1585_v9 = vsub.s32 0, %v3537_v13  ;;  %v1292_v45 = vsel %vm1209_vm0, %v1291_v37, %v1290_v3  ;;  %v1440_v57 = vor.u32 %v1439_v48, %v1438_v5  ;;  %v1731_v47 = vshrl.u32 %v1730_v28, 23 }
 0x1cc   : > { %v1295_v24 = vsel %vm3484_vm15, %v3292_v17, %v1292_v45  ;;  %v1437_v43 = vor.u32 %v1436_v31, %v1435_v34  ;;  %v1443_v35 = vor.u32 %v1442_v11, %v1441_v38  ;;  %v1444_v14 = vshll.u32 %v2569_v41, %v1429_v55 }
 0x1cd   : > { %v2288_v61 = vmin.u32 %v1585_v9, %v3537_v13  ;;  %2468 = vcosq.f32 %v1295_v24  ;;  %v1445_v60 = vshrl.u32 %v4037_v49, %v1430_v40  ;;  %vm1447_vm10 = vcmp.lt.s32.totalorder %v1428_v2, 1 }
 0x1ce   : > { %2470 = vsinq.f32 %v1295_v24  ;;  %vm1448_vm9 = vcmp.lt.s32.totalorder %v1428_v2, 2  ;;  %vm1450_vm11 = vcmp.lt.s32.totalorder %v1428_v2, 4  ;;  %v1605_v58 = vsub.s32 4, %v3526_v29 }
 0x1cf   : > { %v1587_v4 = vclz %v2288_v61  ;;  %v1431_v27 = vshrl.u32 %v2565_v22, %v1430_v40  ;;  %v1446_v56 = vor.u32 %v1445_v60, %v1444_v14  ;;  %v1452_v30 = vsel %vm1450_vm11, %v1440_v57, 2102212464 }
 0x1d0   : > { %vm1449_vm12 = vcmp.lt.s32.totalorder %v1428_v2, 3  ;;  %v1455_v1 = vsel %vm1447_vm10, %v1434_v50, %v1437_v43  ;;  %v1456_v32 = vsel %vm1450_vm11, %v1443_v35, 920167782  ;;  %v1459_v12 = vsel %vm1447_vm10, %v1437_v43, %v1440_v57 }
 0x1d1   : > { %v2289_v53 = vadd.s32 4294967294, %v1587_v4  ;;  %v1451_v23 = vsel %vm1447_vm10, %v1431_v27, %v1434_v50  ;;  %v1457_v21 = vsel %vm1449_vm12, %v1440_v57, %v1456_v32  ;;  %v1460_v39 = vsel %vm1450_vm11, %v1446_v56, 1326507024 }
 0x1d2   : > { %v1453_v55 = vsel %vm1449_vm12, %v1437_v43, %v1452_v30  ;;  %v1458_v63 = vsel %vm1448_vm9, %v1455_v1, %v1457_v21  ;;  %v1461_v16 = vsel %vm1449_vm12, %v1443_v35, %v1460_v39  ;;  %v1606_v51 = vsel %vm1521_vm8, %v1605_v58, %v3526_v29 }
 0x1d3   : > { %vm2290_vm13 = vcmp.lt.s32.totalorder %v2289_v53, 0  ;;  %v1462_v26 = vsel %vm1448_vm9, %v1459_v12, %v1461_v16  ;;  %v3562_v40 = vmul.u32.u64.low %v3534_v10, %v1458_v63  ;;  %v3563_v3 = vmul.u32.u64.high %v3534_v10, %v1458_v63, %v3562_v40 }
 0x1d4   : > { %v1590_v18 = vsel %vm2290_vm13, 0, %v2289_v53  ;;  %v2295_v37 = vadd.s32 4294967169, %v1731_v47  ;;  %vm3571_vm14 = vcmp.le.f32.partialorder %v1519_v36, 0.7853982  ;;  %v1454_v5 = vsel %vm1448_vm9, %v1451_v23, %v1453_v55 }
 0x1d5   : > { %v1591_v28 = vsub.s32 32, %v1590_v18  ;;  %v1595_v0 = vsub.s32 4294967266, %v1590_v18  ;;  %v3577_v48 = vmul.u32.u64.low %v3534_v10, %v1462_v26  ;;  %v3578_v9 = vmul.u32.u64.high %v3534_v10, %v1462_v26, %v3577_v48 }
 0x1d6   : > { %v1592_v34 = vshll.u32 %v3537_v13, %v1590_v18  ;;  %v1737_v45 = vadd.s32 1, %v2295_v37  ;;  %v1301_v29 = vand.u32 3, %v3529_v52  ;;  %v1608_v50 = vsel %vm3571_vm14, 0, %v1606_v51 }
 0x1d7   : > { %v1593_v38 = vshrl.u32 %v1575_v20, %v1591_v28  ;;  %v1596_v11 = vadd.s32 127, %v1595_v0  ;;  %v1473_v36 = vadd.s32 1, %v3563_v3  ;;  %v3587_v2 = vadd.f32 %v2760_v15, %v2724_v42 }
 0x1d8   : > { %vm1738_vm15 = vcmp.gt.s32.totalorder %v1737_v45, 0  ;;  %vm1299_vm0 = vweird.f32 %v3292_v17  ;;  %v1470_v20 = vmul.u32 %v3534_v10, %v1454_v5  ;;  %vm1472_vm1 = vc.u32 %v3578_v9, %v3562_v40 }
 0x1d9   : > { %v1594_v57 = vor.u32 %v1593_v38, %v1592_v34  ;;  %v1597_v47 = vshll.u32 %v1596_v11, 23  ;;  %v1739_v52 = vsel %vm1738_vm15, %v1737_v45, 0  ;;  %v1612_v61 = vadd.s32 3, %v1608_v50  ;;  %v445_v34 = vpop.permute.xlu1 %444 }
 0x1da   : > { %v2469_v13 = vpop.eup %2468  ;;  %v1474_v43 = vsel %vm1472_vm1, %v1473_v36, %v3563_v3  ;;  %v1727_v35 = vand.u32 2147483647, %v3522_v7  ;;  %vm1302_vm2 = vcmp.lt.s32.totalorder %v1301_v29, 2  ;;  %v1741_v60 = vand.u32 31, %v1739_v52 }
 0x1db   : > { %v1598_v24 = vor.u32 4788187, %v1597_v47  ;;  %v2471_v42 = vpop.eup %2470  ;;  %v1307_v15 = vxor.u32 2147483648, %v2469_v13  ;;  %v1475_v14 = vadd.s32 %v1474_v43, %v1470_v20  ;;  %vm1306_vm3 = vcmp.eq.s32.totalorder %v1301_v29, 2 }
 0x1dc   : > { %v1304_v4 = vxor.u32 2147483648, %v2471_v42  ;;  %v1601_v10 = vcvt.s32.f32 %v1594_v57  ;;  %vm1303_vm4 = vcmp.eq.s32.totalorder %v1301_v29, 0  ;;  %v1742_v30 = vsub.s32 32, %v1741_v60 }
 0x1dd   : > { %v1599_v58 = vand.u32 2147483647, %v1598_v24  ;;  %v1308_v27 = vsel %vm1306_vm3, %v1307_v15, %v2471_v42  ;;  %v1476_v56 = vadd.s32 536870912, %v1475_v14  ;;  %v3595_v32 = vand.u32 3, %v1612_v61 }
 0x1de   : > { %v1305_v53 = vsel %vm1303_vm4, %v2469_v13, %v1304_v4  ;;  %v1734_v23 = vand.u32 8388607, %v1727_v35  ;;  %v1744_v39 = vshll.u32 %v2565_v22, %v1741_v60  ;;  %v1745_v55 = vshrl.u32 %v4035_v62, %v1742_v30 }
 0x1df   : > { %v1602_v1 = vmul.f32 %v1601_v10, %v1599_v58  ;;  %v1309_v21 = vsel %vm1302_vm2, %v1305_v53, %v1308_v27  ;;  %v1477_v12 = vshrl.u32 %v1476_v56, 30  ;;  %v1748_v18 = vshrl.u32 %v4036_v54, %v1742_v30 }
 0x1e0   : > { %v1310_v63 = vsel %vm1299_vm0, nan, %v1309_v21  ;;  %v1751_v26 = vshrl.u32 %v2568_v33, %v1742_v30  ;;  %v1740_v28 = vshrl.u32 %v1739_v52, 5  ;;  %v1747_v0 = vshll.u32 %v4035_v62, %v1741_v60 }
 0x1e1   : > { %v1603_v16 = vxor.u32 2147483648, %v1602_v1  ;;  %2150 = vst [vmem:[%s3073_s29 + $0x38] sm:$0xff] %v1310_v63  ;;  %v1478_v3 = vshll.u32 %v1477_v12, 30  ;;  %v1750_v51 = vshll.u32 %v4036_v54, %v1741_v60  ;;  %v1746_v5 = vor.u32 %v1745_v55, %v1744_v39  ;;  %v457_v39 = vpop.permute.xlu0 %456 }
 0x1e2   : > { %v1753_v48 = vshll.u32 %v2568_v33, %v1741_v60  ;;  %v1754_v17 = vshrl.u32 %v2569_v41, %v1742_v30  ;;  %v1749_v45 = vor.u32 %v1748_v18, %v1747_v0  ;;  %v1756_v36 = vshll.u32 %v2569_v41, %v1741_v60 }
 0x1e3   : > { %v1604_v37 = vsel %vm1521_vm8, %v1603_v16, %v1602_v1  ;;  %v3616_v11 = vsub.s32 %v1475_v14, %v1478_v3  ;;  %v1752_v29 = vor.u32 %v1751_v26, %v1750_v51  ;;  %v1757_v57 = vshrl.u32 %v4037_v49, %v1742_v30 }
 0x1e4   : > { %v1607_v38 = vsel %vm3571_vm14, %v3361_v44, %v1604_v37  ;;  %v1755_v50 = vor.u32 %v1754_v17, %v1753_v48  ;;  %v1735_v20 = vor.u32 8388608, %v1734_v23  ;;  %v3622_v52 = vadd.f32 %v445_v34, %v3501_v8 }
 0x1e5   : > { %2472 = vcosq.f32 %v1607_v38  ;;  %v1481_v47 = vsub.s32 0, %v3616_v11  ;;  %v1758_v13 = vor.u32 %v1757_v57, %v1756_v36  ;;  %vm1759_vm5 = vcmp.lt.s32.totalorder %v1740_v28, 1 }
 0x1e6   : > { %2474 = vsinq.f32 %v1607_v38  ;;  %vm1761_vm6 = vcmp.lt.s32.totalorder %v1740_v28, 3  ;;  %vm1762_vm7 = vcmp.lt.s32.totalorder %v1740_v28, 4  ;;  %vm3626_vm8 = vcmp.le.f32.partialorder %v1415_v6, 0.7853982 }
 0x1e7   : > { %v2284_v24 = vmin.u32 %v1481_v47, %v3616_v11  ;;  %v1764_v61 = vsel %vm1762_vm7, %v1752_v29, 2102212464  ;;  %v1767_v43 = vsel %vm1759_vm5, %v1746_v5, %v1749_v45  ;;  %v1768_v42 = vsel %vm1762_vm7, %v1755_v50, 920167782 }
 0x1e8   : > { %v1743_v15 = vshrl.u32 %v2565_v22, %v1742_v30  ;;  %v1769_v8 = vsel %vm1761_vm6, %v1752_v29, %v1768_v42  ;;  %v1771_v14 = vsel %vm1759_vm5, %v1749_v45, %v1752_v29  ;;  %v1772_v60 = vsel %vm1762_vm7, %v1758_v13, 1326507024 }
 0x1e9   : > { %v1483_v4 = vclz %v2284_v24  ;;  %v1501_v58 = vsub.s32 4, %v1477_v12  ;;  %vm1760_vm10 = vcmp.lt.s32.totalorder %v1740_v28, 2  ;;  %v1775_v6 = vshll.u32 %v1735_v20, 8 }
 0x1ea   : > { %v1763_v10 = vsel %vm1759_vm5, %v1743_v15, %v1746_v5  ;;  %v1765_v27 = vsel %vm1761_vm6, %v1749_v45, %v1764_v61  ;;  %v1770_v56 = vsel %vm1760_vm10, %v1767_v43, %v1769_v8  ;;  %v1773_v53 = vsel %vm1761_vm6, %v1755_v50, %v1772_v60 }
 0x1eb   : > { %v2285_v1 = vadd.s32 4294967294, %v1483_v4  ;;  %v1774_v30 = vsel %vm1760_vm10, %v1771_v14, %v1773_v53  ;;  %v3640_v23 = vmul.u32.u64.low %v1775_v6, %v1770_v56  ;;  %v3641_v21 = vmul.u32.u64.high %v1775_v6, %v1770_v56, %v3640_v23 }
 0x1ec   : > { %vm1417_vm9 = vcmp.lt.s32.totalorder %v3462_v59, 0  ;;  %v3644_v55 = vmul.u32.u64.low %v1775_v6, %v1774_v30  ;;  %v3645_v63 = vmul.u32.u64.high %v1775_v6, %v1774_v30, %v3644_v55  ;;  %v1626_v16 = vand.u32 2139095040, %v3622_v52 }
 0x1ed   : > { %vm1614_vm11 = vcmp.lt.s32.totalorder %v3595_v32, 2  ;;  %vm1615_vm12 = vcmp.eq.s32.totalorder %v3595_v32, 0  ;;  %vm2286_vm13 = vcmp.lt.s32.totalorder %v2285_v1, 0  ;;  %v1502_v18 = vsel %vm1417_vm9, %v1501_v58, %v1477_v12 }
 0x1ee   : > { %v1766_v26 = vsel %vm1760_vm10, %v1763_v10, %v1765_v27  ;;  %vm1611_vm14 = vweird.f32 %v3361_v44  ;;  %v1486_v3 = vsel %vm2286_vm13, 0, %v2285_v1  ;;  %v1623_v0 = vand.u32 2147483647, %v3622_v52 }
 0x1ef   : > { %v1627_v51 = vshrl.u32 %v1626_v16, 23  ;;  %v3656_v37 = vadd.f32 %v457_v39, %v3508_v19  ;;  %v1471_v5 = vadd.s32 %v3562_v40, %v3578_v9  ;;  %v1487_v48 = vsub.s32 32, %v1486_v3 }
 0x1f0   : > { %v1491_v17 = vsub.s32 4294967266, %v1486_v3  ;;  %v1785_v34 = vadd.s32 1, %v3641_v21  ;;  %v1504_v12 = vsel %vm3626_vm8, 0, %v1502_v18  ;;  %v1782_v28 = vmul.u32 %v1775_v6, %v1766_v26 }
 0x1f1   : > { %vm1784_vm15 = vc.u32 %v3645_v63, %v3640_v23  ;;  %v2291_v38 = vadd.s32 4294967169, %v1627_v51  ;;  %v1488_v29 = vshll.u32 %v3616_v11, %v1486_v3  ;;  %v1489_v50 = vshrl.u32 %v1471_v5, %v1487_v48 }
 0x1f2   : > { %v2473_v45 = vpop.eup %2472  ;;  %v1492_v19 = vadd.s32 127, %v1491_v17  ;;  %v1786_v36 = vsel %vm1784_vm15, %v1785_v34, %v3641_v21  ;;  %v1630_v47 = vand.u32 8388607, %v1623_v0  ;;  %vm1618_vm0 = vcmp.eq.s32.totalorder %v3595_v32, 2 }
 0x1f3   : > { %v2475_v57 = vpop.eup %2474  ;;  %v1619_v40 = vxor.u32 2147483648, %v2473_v45  ;;  %v1787_v9 = vadd.s32 %v1786_v36, %v1782_v28  ;;  %v1633_v20 = vadd.s32 1, %v2291_v38  ;;  %v1490_v24 = vor.u32 %v1489_v50, %v1488_v29 }
 0x1f4   : > { %v1616_v13 = vxor.u32 2147483648, %v2475_v57  ;;  %v1493_v61 = vshll.u32 %v1492_v19, 23  ;;  %v1508_v42 = vadd.s32 3, %v1504_v12  ;;  %v1938_v60 = vand.u32 2139095040, %v3656_v37 }
 0x1f5   : > { %v1620_v43 = vsel %vm1618_vm0, %v1619_v40, %v2475_v57  ;;  %v1788_v11 = vadd.s32 536870912, %v1787_v9  ;;  %vm1634_vm1 = vcmp.gt.s32.totalorder %v1633_v20, 0  ;;  %v1631_v6 = vor.u32 8388608, %v1630_v47 }
 0x1f6   : > { %v1617_v15 = vsel %vm1615_vm12, %v2473_v45, %v1616_v13  ;;  %v1494_v8 = vor.u32 4788187, %v1493_v61  ;;  %v1635_v14 = vsel %vm1634_vm1, %v1633_v20, 0  ;;  %v1497_v53 = vcvt.s32.f32 %v1490_v24 }
 0x1f7   : > { %v1621_v4 = vsel %vm1614_vm11, %v1617_v15, %v1620_v43  ;;  %v3674_v58 = vshrl.u32 %v1788_v11, 30  ;;  %v1637_v10 = vand.u32 31, %v1635_v14  ;;  %v3680_v39 = vand.u32 3, %v1508_v42 }
 0x1f8   : > { %v1622_v27 = vsel %vm1611_vm14, nan, %v1621_v4  ;;  %v1495_v56 = vand.u32 2147483647, %v1494_v8  ;;  %v1783_v55 = vadd.s32 %v3640_v23, %v3645_v63  ;;  %v1935_v32 = vand.u32 2147483647, %v3656_v37 }
 0x1f9   : > { %2153 = vst [vmem:[%s3073_s29 + $0x50] sm:$0xff] %v1622_v27  ;;  %v1790_v1 = vshll.u32 %v3674_v58, 30  ;;  %v1638_v30 = vsub.s32 32, %v1637_v10  ;;  %v3687_v26 = vshll.u32 %v1631_v6, 8  ;;  %v1939_v44 = vshrl.u32 %v1938_v60, 23 }
 0x1fa   : > { %v1498_v21 = vmul.f32 %v1497_v53, %v1495_v56  ;;  %v1640_v51 = vshll.u32 %v2565_v22, %v1637_v10  ;;  %v1643_v23 = vshll.u32 %v4035_v62, %v1637_v10  ;;  %v1646_v63 = vshll.u32 %v4036_v54, %v1637_v10 }
 0x1fb   : > { %v3684_v16 = vsub.s32 %v1787_v9, %v1790_v1  ;;  %v1641_v18 = vshrl.u32 %v4035_v62, %v1638_v30  ;;  %v1644_v5 = vshrl.u32 %v4036_v54, %v1638_v30  ;;  %v1647_v48 = vshrl.u32 %v2568_v33, %v1638_v30 }
 0x1fc   : > { %v1499_v3 = vxor.u32 2147483648, %v1498_v21  ;;  %v1650_v34 = vshrl.u32 %v2569_v41, %v1638_v30  ;;  %v1636_v28 = vshrl.u32 %v1635_v14, 5  ;;  %v1649_v45 = vshll.u32 %v2568_v33, %v1637_v10 }
 0x1fd   : > { %v1793_v17 = vsub.s32 0, %v3684_v16  ;;  %v1642_v38 = vor.u32 %v1641_v18, %v1640_v51  ;;  %v1645_v19 = vor.u32 %v1644_v5, %v1643_v23  ;;  %v1648_v36 = vor.u32 %v1647_v48, %v1646_v63 }
 0x1fe   : > { %v1500_v12 = vsel %vm1417_vm9, %v1499_v3, %v1498_v21  ;;  %v1651_v57 = vor.u32 %v1650_v34, %v1649_v45  ;;  %v1652_v40 = vshll.u32 %v2569_v41, %v1637_v10  ;;  %v1653_v9 = vshrl.u32 %v4037_v49, %v1638_v30 }
 0x1ff   : > { %v1503_v29 = vsel %vm3626_vm8, %v3462_v59, %v1500_v12  ;;  %v2296_v50 = vmin.u32 %v1793_v17, %v3684_v16  ;;  %v2303_v20 = vadd.s32 4294967169, %v1939_v44  ;;  %v3707_v13 = vand.u32 8388607, %v1935_v32 }
 0x200   : > { %2476 = vcosq.f32 %v1503_v29  ;;  %vm1729_vm2 = vcmp.lt.s32.totalorder %v3522_v7, 0  ;;  %v1813_v31 = vsub.s32 4, %v3674_v58  ;;  %v1639_v24 = vshrl.u32 %v2565_v22, %v1638_v30 }
 0x201   : > { %2478 = vsinq.f32 %v1503_v29  ;;  %v1795_v47 = vclz %v2296_v50  ;;  %v1654_v61 = vor.u32 %v1653_v9, %v1652_v40  ;;  %vm1655_vm3 = vcmp.lt.s32.totalorder %v1636_v28, 1 }
 0x202   : > { %vm1657_vm4 = vcmp.lt.s32.totalorder %v1636_v28, 3  ;;  %vm1658_vm5 = vcmp.lt.s32.totalorder %v1636_v28, 4  ;;  %v1663_v42 = vsel %vm1655_vm3, %v1642_v38, %v1645_v19  ;;  %v1667_v8 = vsel %vm1655_vm3, %v1645_v19, %v1648_v36 }
 0x203   : > { %v2297_v43 = vadd.s32 4294967294, %v1795_v47  ;;  %v1660_v11 = vsel %vm1658_vm5, %v1648_v36, 2102212464  ;;  %v1664_v15 = vsel %vm1658_vm5, %v1651_v57, 920167782  ;;  %vm1656_vm8 = vcmp.lt.s32.totalorder %v1636_v28, 2 }
 0x204   : > { %v1668_v14 = vsel %vm1658_vm5, %v1654_v61, 1326507024  ;;  %vm3714_vm6 = vcmp.le.f32.partialorder %v1727_v35, 0.7853982  ;;  %v1665_v4 = vsel %vm1657_vm4, %v1648_v36, %v1664_v15  ;;  %v1659_v27 = vsel %vm1655_vm3, %v1639_v24, %v1642_v38 }
 0x205   : > { %vm2298_vm7 = vcmp.lt.s32.totalorder %v2297_v43, 0  ;;  %v1669_v6 = vsel %vm1657_vm4, %v1651_v57, %v1668_v14  ;;  %v1666_v56 = vsel %vm1656_vm8, %v1663_v42, %v1665_v4  ;;  %v1661_v21 = vsel %vm1657_vm4, %v1645_v19, %v1660_v11 }
 0x206   : > { %v1798_v10 = vsel %vm2298_vm7, 0, %v2297_v43  ;;  %v1670_v53 = vsel %vm1656_vm8, %v1667_v8, %v1669_v6  ;;  %v1945_v35 = vadd.s32 1, %v2303_v20  ;;  %vm1507_vm9 = vweird.f32 %v3462_v59 }
 0x207   : > { %v1799_v1 = vsub.s32 32, %v1798_v10  ;;  %v1803_v30 = vsub.s32 4294967266, %v1798_v10  ;;  %v3724_v18 = vmul.u32.u64.low %v3687_v26, %v1670_v53  ;;  %v3725_v44 = vmul.u32.u64.high %v3687_v26, %v1670_v53, %v3724_v18 }
 0x208   : > { %v3728_v3 = vmul.u32.u64.low %v3687_v26, %v1666_v56  ;;  %v3729_v51 = vmul.u32.u64.high %v3687_v26, %v1666_v56, %v3728_v3  ;;  %v1800_v5 = vshll.u32 %v3684_v16, %v1798_v10  ;;  %vm1946_vm10 = vcmp.gt.s32.totalorder %v1945_v35, 0 }
 0x209   : > { %v1801_v48 = vshrl.u32 %v1783_v55, %v1799_v1  ;;  %v1804_v17 = vadd.s32 127, %v1803_v30  ;;  %vm1510_vm11 = vcmp.lt.s32.totalorder %v3680_v39, 2  ;;  %v1662_v23 = vsel %vm1656_vm8, %v1659_v27, %v1661_v21 }
 0x20a   : > { %v1947_v63 = vsel %vm1946_vm10, %v1945_v35, 0  ;;  %v3738_v34 = vadd.f32 %v2764_v25, %v2730_v46  ;;  %v1814_v16 = vsel %vm1729_vm2, %v1813_v31, %v3674_v58  ;;  %vm1511_vm12 = vcmp.eq.s32.totalorder %v3680_v39, 0  ;;  %v453_v35 = vpop.permute.xlu1 %452 }
 0x20b   : > { %v1802_v12 = vor.u32 %v1801_v48, %v1800_v5  ;;  %v1805_v38 = vshll.u32 %v1804_v17, 23  ;;  %v1949_v55 = vand.u32 31, %v1947_v63  ;;  %vm1514_vm13 = vcmp.eq.s32.totalorder %v3680_v39, 2 }
 0x20c   : > { %vm1680_vm14 = vc.u32 %v3725_v44, %v3728_v3  ;;  %v1681_v28 = vadd.s32 1, %v3729_v51  ;;  %v1678_v46 = vmul.u32 %v3687_v26, %v1662_v23  ;;  %v1943_v25 = vor.u32 8388608, %v3707_v13 }
 0x20d   : > { %v2477_v45 = vpop.eup %2476  ;;  %v1806_v29 = vor.u32 4788187, %v1805_v38  ;;  %v1950_v50 = vsub.s32 32, %v1949_v55  ;;  %v1816_v58 = vsel %vm3714_vm6, 0, %v1814_v16  ;;  %v3753_v40 = vshrl.u32 %v1947_v63, 5 }
 0x20e   : > { %v2479_v19 = vpop.eup %2478  ;;  %v1515_v36 = vxor.u32 2147483648, %v2477_v45  ;;  %v1682_v57 = vsel %vm1680_vm14, %v1681_v28, %v3729_v51  ;;  %v1809_v20 = vcvt.s32.f32 %v1802_v12  ;;  %v1952_v26 = vshll.u32 %v2565_v22, %v1949_v55 }
 0x20f   : > { %v1512_v9 = vxor.u32 2147483648, %v2479_v19  ;;  %v1807_v47 = vand.u32 2147483647, %v1806_v29  ;;  %v1683_v31 = vadd.s32 %v1682_v57, %v1678_v46  ;;  %v1953_v13 = vshrl.u32 %v4035_v62, %v1950_v50 }
 0x210   : > { %v1516_v24 = vsel %vm1514_vm13, %v1515_v36, %v2479_v19  ;;  %v1956_v61 = vshrl.u32 %v4036_v54, %v1950_v50  ;;  %v1959_v15 = vshrl.u32 %v2568_v33, %v1950_v50  ;;  %v1955_v14 = vshll.u32 %v4035_v62, %v1949_v55 }
 0x211   : > { %v1513_v43 = vsel %vm1511_vm12, %v2477_v45, %v1512_v9  ;;  %v1810_v42 = vmul.f32 %v1809_v20, %v1807_v47  ;;  %v1684_v11 = vadd.s32 536870912, %v1683_v31  ;;  %v1958_v4 = vshll.u32 %v4036_v54, %v1949_v55 }
 0x212   : > { %v1517_v8 = vsel %vm1510_vm11, %v1513_v43, %v1516_v24  ;;  %v1961_v6 = vshll.u32 %v2568_v33, %v1949_v55  ;;  %v1962_v53 = vshrl.u32 %v2569_v41, %v1950_v50  ;;  %v1954_v1 = vor.u32 %v1953_v13, %v1952_v26 }
 0x213   : > { %v1518_v10 = vsel %vm1507_vm9, nan, %v1517_v8  ;;  %v1811_v27 = vxor.u32 2147483648, %v1810_v42  ;;  %v1685_v56 = vshrl.u32 %v1684_v11, 30  ;;  %v1957_v30 = vor.u32 %v1956_v61, %v1955_v14 }
 0x214   : > { %2152 = vst [vmem:[%s3073_s29 + $0x48] sm:$0xff] %v1518_v10  ;;  %v1964_v21 = vshll.u32 %v2569_v41, %v1949_v55  ;;  %v1965_v39 = vshrl.u32 %v4037_v49, %v1950_v50  ;;  %v1960_v5 = vor.u32 %v1959_v15, %v1958_v4  ;;  %v1963_v48 = vor.u32 %v1962_v53, %v1961_v6 }
 0x215   : > { %v1812_v18 = vsel %vm1729_vm2, %v1811_v27, %v1810_v42  ;;  %v1686_v51 = vshll.u32 %v1685_v56, 30  ;;  %v1820_v17 = vadd.s32 3, %v1816_v58  ;;  %v1983_v63 = vshll.u32 %v1943_v25, 8 }
 0x216   : > { %v1815_v59 = vsel %vm3714_vm6, %v3522_v7, %v1812_v18  ;;  %v1966_v23 = vor.u32 %v1965_v39, %v1964_v21  ;;  %vm1967_vm15 = vcmp.lt.s32.totalorder %v3753_v40, 1  ;;  %v3783_v38 = vadd.f32 %v453_v35, %v3587_v2 }
 0x217   : > { %2480 = vcosq.f32 %v1815_v59  ;;  %v3779_v12 = vsub.s32 %v1683_v31, %v1686_v51  ;;  %v1951_v16 = vshrl.u32 %v2565_v22, %v1950_v50  ;;  %vm1970_vm0 = vcmp.lt.s32.totalorder %v3753_v40, 4 }
 0x218   : > { %2482 = vsinq.f32 %v1815_v59  ;;  %v1975_v55 = vsel %vm1967_vm15, %v1954_v1, %v1957_v30  ;;  %vm1969_vm1 = vcmp.lt.s32.totalorder %v3753_v40, 3  ;;  %v1972_v28 = vsel %vm1970_vm0, %v1960_v5, 2102212464 }
 0x219   : > { %v1689_v60 = vsub.s32 0, %v3779_v12  ;;  %v1976_v45 = vsel %vm1970_vm0, %v1963_v48, 920167782  ;;  %vm1968_vm2 = vcmp.lt.s32.totalorder %v3753_v40, 2  ;;  %v1979_v46 = vsel %vm1967_vm15, %v1957_v30, %v1960_v5 }
 0x21a   : > { %v1977_v29 = vsel %vm1969_vm1, %v1960_v5, %v1976_v45  ;;  %v1980_v25 = vsel %vm1970_vm0, %v1966_v23, 1326507024  ;;  %v1971_v19 = vsel %vm1967_vm15, %v1951_v16, %v1954_v1  ;;  %v1973_v58 = vsel %vm1969_vm1, %v1957_v30, %v1972_v28  ;;  %v461_v1 = vpop.permute.xlu1 %460 }
 0x21b   : > { %v2292_v2 = vmin.u32 %v1689_v60, %v3779_v12  ;;  %v1978_v50 = vsel %vm1968_vm2, %v1975_v55, %v1977_v29  ;;  %v1981_v36 = vsel %vm1969_vm1, %v1963_v48, %v1980_v25  ;;  %v1821_v20 = vand.u32 3, %v1820_v17 }
 0x21c   : > { %v1982_v57 = vsel %vm1968_vm2, %v1979_v46, %v1981_v36  ;;  %v3795_v9 = vmul.u32.u64.low %v1983_v63, %v1978_v50  ;;  %v3796_v47 = vmul.u32.u64.high %v1983_v63, %v1978_v50, %v3795_v9  ;;  %v1709_v24 = vsub.s32 4, %v1685_v56 }
 0x21d   : > { %v1691_v31 = vclz %v2292_v2  ;;  %v3798_v26 = vmul.u32.u64.low %v1983_v63, %v1982_v57  ;;  %v3799_v13 = vmul.u32.u64.high %v1983_v63, %v1982_v57, %v3798_v26  ;;  %v1974_v43 = vsel %vm1968_vm2, %v1971_v19, %v1973_v58 }
 0x21e   : > { %v1834_v42 = vand.u32 2139095040, %v3783_v38  ;;  %vm3806_vm3 = vcmp.le.f32.partialorder %v1623_v0, 0.7853982  ;;  %vm1625_vm4 = vcmp.lt.s32.totalorder %v3622_v52, 0  ;;  %v1993_v15 = vadd.s32 1, %v3796_v47 }
 0x21f   : > { %v2293_v61 = vadd.s32 4294967294, %v1691_v31  ;;  %v1831_v8 = vand.u32 2147483647, %v3783_v38  ;;  %vm1819_vm5 = vweird.f32 %v3522_v7  ;;  %vm1822_vm6 = vcmp.lt.s32.totalorder %v1821_v20, 2 }
 0x220   : > { %v1710_v40 = vsel %vm1625_vm4, %v1709_v24, %v1685_v56  ;;  %v1835_v14 = vshrl.u32 %v1834_v42, 23  ;;  %vm1826_vm8 = vcmp.eq.s32.totalorder %v1821_v20, 2  ;;  %v1990_v0 = vmul.u32 %v1983_v63, %v1974_v43 }
 0x221   : > { %vm2294_vm7 = vcmp.lt.s32.totalorder %v2293_v61, 0  ;;  %vm1992_vm10 = vc.u32 %v3799_v13, %v3795_v9  ;;  %v1679_v6 = vadd.s32 %v3728_v3, %v3725_v44  ;;  %v1712_v21 = vsel %vm3806_vm3, 0, %v1710_v40 }
 0x222   : > { %v1694_v4 = vsel %vm2294_vm7, 0, %v2293_v61  ;;  %v1994_v53 = vsel %vm1992_vm10, %v1993_v15, %v3796_v47  ;;  %v2299_v56 = vadd.s32 4294967169, %v1835_v14  ;;  %v1838_v35 = vand.u32 8388607, %v1831_v8 }
 0x223   : > { %v1695_v10 = vsub.s32 32, %v1694_v4  ;;  %v1699_v27 = vsub.s32 4294967266, %v1694_v4  ;;  %v1995_v39 = vadd.s32 %v1994_v53, %v1990_v0  ;;  %v1696_v5 = vshll.u32 %v3779_v12, %v1694_v4 }
 0x224   : > { %v2481_v30 = vpop.eup %2480  ;;  %v1841_v17 = vadd.s32 1, %v2299_v56  ;;  %v3826_v23 = vadd.f32 %v461_v1, %v3738_v34  ;;  %vm1823_vm9 = vcmp.eq.s32.totalorder %v1821_v20, 0  ;;  %v1716_v28 = vadd.s32 3, %v1712_v21 }
 0x225   : > { %v2483_v18 = vpop.eup %2482  ;;  %v1827_v51 = vxor.u32 2147483648, %v2481_v30  ;;  %v1697_v48 = vshrl.u32 %v1679_v6, %v1695_v10  ;;  %v1700_v44 = vadd.s32 127, %v1699_v27  ;;  %v1996_v59 = vadd.s32 536870912, %v1995_v39 }
 0x226   : > { %v1824_v3 = vxor.u32 2147483648, %v2483_v18  ;;  %vm1842_vm11 = vcmp.gt.s32.totalorder %v1841_v17, 0  ;;  %v1839_v46 = vor.u32 8388608, %v1838_v35  ;;  %v2042_v19 = vand.u32 2139095040, %v3826_v23 }
 0x227   : > { %v1828_v63 = vsel %vm1826_vm8, %v1827_v51, %v2483_v18  ;;  %v1698_v16 = vor.u32 %v1697_v48, %v1696_v5  ;;  %v1701_v55 = vshll.u32 %v1700_v44, 23  ;;  %v3829_v45 = vshrl.u32 %v1996_v59, 30 }
 0x228   : > { %v1825_v60 = vsel %vm1823_vm9, %v2481_v30, %v1824_v3  ;;  %v1843_v25 = vsel %vm1842_vm11, %v1841_v17, 0  ;;  %v3837_v57 = vand.u32 3, %v1716_v28  ;;  %v1991_v47 = vadd.s32 %v3795_v9, %v3799_v13 }
 0x229   : > { %v1829_v12 = vsel %vm1822_vm6, %v1825_v60, %v1828_v63  ;;  %v1702_v29 = vor.u32 4788187, %v1701_v55  ;;  %v1998_v2 = vshll.u32 %v3829_v45, 30  ;;  %v1705_v36 = vcvt.s32.f32 %v1698_v16 }
 0x22a   : > { %v1830_v34 = vsel %vm1819_vm5, nan, %v1829_v12  ;;  %v1845_v58 = vand.u32 31, %v1843_v25  ;;  %v3840_v26 = vshll.u32 %v1839_v46, 8  ;;  %v2039_v7 = vand.u32 2147483647, %v3826_v23 }
 0x22b   : > { %2155 = vst [vmem:[%s3073_s29 + $0x60] sm:$0xff] %v1830_v34  ;;  %v1703_v50 = vand.u32 2147483647, %v1702_v29  ;;  %v1999_v20 = vsub.s32 %v1995_v39, %v1998_v2  ;;  %v1844_v43 = vshrl.u32 %v1843_v25, 5  ;;  %v2043_v15 = vshrl.u32 %v2042_v19, 23 }
 0x22c   : > { %v1846_v24 = vsub.s32 32, %v1845_v58  ;;  %v1848_v42 = vshll.u32 %v2565_v22, %v1845_v58  ;;  %v1851_v4 = vshll.u32 %v4035_v62, %v1845_v58  ;;  %v1854_v13 = vshll.u32 %v4036_v54, %v1845_v58 }
 0x22d   : > { %v1706_v31 = vmul.f32 %v1705_v36, %v1703_v50  ;;  %v2001_v61 = vsub.s32 0, %v1999_v20  ;;  %v1857_v10 = vshll.u32 %v2568_v33, %v1845_v58  ;;  %v2307_v56 = vadd.s32 4294967169, %v2043_v15 }
 0x22e   : > { %v1849_v14 = vshrl.u32 %v4035_v62, %v1846_v24  ;;  %v1852_v0 = vshrl.u32 %v4036_v54, %v1846_v24  ;;  %v1855_v6 = vshrl.u32 %v2568_v33, %v1846_v24  ;;  %v1858_v30 = vshrl.u32 %v2569_v41, %v1846_v24 }
 0x22f   : > { %v1707_v40 = vxor.u32 2147483648, %v1706_v31  ;;  %v2304_v9 = vmin.u32 %v2001_v61, %v1999_v20  ;;  %v3858_v35 = vand.u32 8388607, %v2039_v7  ;;  %vm1863_vm12 = vcmp.lt.s32.totalorder %v1844_v43, 1 }
 0x230   : > { %v1850_v53 = vor.u32 %v1849_v14, %v1848_v42  ;;  %v1853_v1 = vor.u32 %v1852_v0, %v1851_v4  ;;  %v1856_v18 = vor.u32 %v1855_v6, %v1854_v13  ;;  %v1859_v51 = vor.u32 %v1858_v30, %v1857_v10 }
 0x231   : > { %v1708_v27 = vsel %vm1625_vm4, %v1707_v40, %v1706_v31  ;;  %v2003_v39 = vclz %v2304_v9  ;;  %v1860_v48 = vshll.u32 %v2569_v41, %v1845_v58  ;;  %v1861_v44 = vshrl.u32 %v4037_v49, %v1846_v24 }
 0x232   : > { %v1711_v21 = vsel %vm3806_vm3, %v3622_v52, %v1708_v27  ;;  %v1847_v3 = vshrl.u32 %v2565_v22, %v1846_v24  ;;  %vm1865_vm13 = vcmp.lt.s32.totalorder %v1844_v43, 3  ;;  %vm1866_vm14 = vcmp.lt.s32.totalorder %v1844_v43, 4 }
 0x233   : > { %2484 = vcosq.f32 %v1711_v21  ;;  %v2305_v5 = vadd.s32 4294967294, %v2003_v39  ;;  %v1871_v11 = vsel %vm1863_vm12, %v1850_v53, %v1853_v1  ;;  %v1862_v59 = vor.u32 %v1861_v44, %v1860_v48 }
 0x234   : > { %2486 = vsinq.f32 %v1711_v21  ;;  %v1868_v17 = vsel %vm1866_vm14, %v1856_v18, 2102212464  ;;  %v1872_v63 = vsel %vm1866_vm14, %v1859_v51, 920167782  ;;  %v1867_v55 = vsel %vm1863_vm12, %v1847_v3, %v1850_v53 }
 0x235   : > { %vm2306_vm15 = vcmp.lt.s32.totalorder %v2305_v5, 0  ;;  %v1869_v60 = vsel %vm1865_vm13, %v1853_v1, %v1868_v17  ;;  %v1873_v28 = vsel %vm1865_vm13, %v1856_v18, %v1872_v63  ;;  %vm1864_vm0 = vcmp.lt.s32.totalorder %v1844_v43, 2 }
 0x236   : > { %v2006_v16 = vsel %vm2306_vm15, 0, %v2305_v5  ;;  %v1875_v46 = vsel %vm1863_vm12, %v1853_v1, %v1856_v18  ;;  %v1874_v34 = vsel %vm1864_vm0, %v1871_v11, %v1873_v28  ;;  %v1876_v2 = vsel %vm1866_vm14, %v1862_v59, 1326507024 }
 0x237   : > { %v2007_v12 = vsub.s32 32, %v2006_v16  ;;  %v2011_v29 = vsub.s32 4294967266, %v2006_v16  ;;  %v2008_v25 = vshll.u32 %v1999_v20, %v2006_v16  ;;  %v2049_v19 = vadd.s32 1, %v2307_v56 }
 0x238   : > { %v1870_v58 = vsel %vm1864_vm0, %v1867_v55, %v1869_v60  ;;  %v1877_v31 = vsel %vm1865_vm13, %v1859_v51, %v1876_v2  ;;  %v3873_v61 = vmul.u32.u64.low %v3840_v26, %v1874_v34  ;;  %v3874_v42 = vmul.u32.u64.high %v3840_v26, %v1874_v34, %v3873_v61 }
 0x239   : > { %v2009_v50 = vshrl.u32 %v1991_v47, %v2007_v12  ;;  %v2012_v36 = vadd.s32 127, %v2011_v29  ;;  %v1878_v24 = vsel %vm1864_vm0, %v1875_v46, %v1877_v31  ;;  %vm2050_vm1 = vcmp.gt.s32.totalorder %v2049_v19, 0 }
 0x23a   : > { %v3878_v20 = vmul.u32.u64.low %v3840_v26, %v1878_v24  ;;  %v3879_v14 = vmul.u32.u64.high %v3840_v26, %v1878_v24, %v3878_v20  ;;  %vm1715_vm2 = vweird.f32 %v3622_v52  ;;  %vm1937_vm3 = vcmp.lt.s32.totalorder %v3656_v37, 0 }
 0x23b   : > { %v2010_v15 = vor.u32 %v2009_v50, %v2008_v25  ;;  %v2013_v40 = vshll.u32 %v2012_v36, 23  ;;  %v2021_v47 = vsub.s32 4, %v3829_v45  ;;  %v2051_v43 = vsel %vm2050_vm1, %v2049_v19, 0 }
 0x23c   : > { %vm1718_vm4 = vcmp.lt.s32.totalorder %v3837_v57, 2  ;;  %vm1719_vm5 = vcmp.eq.s32.totalorder %v3837_v57, 0  ;;  %vm3888_vm6 = vcmp.le.f32.partialorder %v1935_v32, 0.7853982  ;;  %v2053_v9 = vand.u32 31, %v2051_v43 }
 0x23d   : > { %v2014_v0 = vor.u32 4788187, %v2013_v40  ;;  %vm1722_vm7 = vcmp.eq.s32.totalorder %v3837_v57, 2  ;;  %v1886_v13 = vmul.u32 %v3840_v26, %v1870_v58  ;;  %v1889_v6 = vadd.s32 1, %v3874_v42 }
 0x23e   : > { %v2047_v10 = vor.u32 8388608, %v3858_v35  ;;  %v2017_v1 = vcvt.s32.f32 %v2010_v15  ;;  %vm1888_vm8 = vc.u32 %v3879_v14, %v3873_v61  ;;  %v2054_v32 = vsub.s32 32, %v2053_v9 }
 0x23f   : > { %v2015_v53 = vand.u32 2147483647, %v2014_v0  ;;  %v2022_v39 = vsel %vm1937_vm3, %v2021_v47, %v3829_v45  ;;  %v1890_v56 = vsel %vm1888_vm8, %v1889_v6, %v3874_v42  ;;  %v2052_v26 = vshrl.u32 %v2051_v43, 5 }
 0x240   : > { %v2485_v27 = vpop.eup %2484  ;;  %v1891_v5 = vadd.s32 %v1890_v56, %v1886_v13  ;;  %v2056_v35 = vshll.u32 %v2565_v22, %v2053_v9  ;;  %v2057_v44 = vshrl.u32 %v4035_v62, %v2054_v32  ;;  %v2059_v3 = vshll.u32 %v4035_v62, %v2053_v9 }
 0x241   : > { %v2487_v30 = vpop.eup %2486  ;;  %v1723_v21 = vxor.u32 2147483648, %v2485_v27  ;;  %v2018_v51 = vmul.f32 %v2017_v1, %v2015_v53  ;;  %v2060_v11 = vshrl.u32 %v4036_v54, %v2054_v32  ;;  %v2062_v63 = vshll.u32 %v4036_v54, %v2053_v9 }
 0x242   : > { %v1720_v18 = vxor.u32 2147483648, %v2487_v30  ;;  %v1892_v17 = vadd.s32 536870912, %v1891_v5  ;;  %v2058_v55 = vor.u32 %v2057_v44, %v2056_v35  ;;  %v2063_v28 = vshrl.u32 %v2568_v33, %v2054_v32 }
 0x243   : > { %v1724_v48 = vsel %vm1722_vm7, %v1723_v21, %v2487_v30  ;;  %v2019_v59 = vxor.u32 2147483648, %v2018_v51  ;;  %v2061_v60 = vor.u32 %v2060_v11, %v2059_v3  ;;  %v2065_v46 = vshll.u32 %v2568_v33, %v2053_v9 }
 0x244   : > { %v1721_v45 = vsel %vm1719_vm5, %v2485_v27, %v1720_v18  ;;  %v3918_v29 = vshrl.u32 %v1892_v17, 30  ;;  %v2066_v57 = vshrl.u32 %v2569_v41, %v2054_v32  ;;  %v2068_v25 = vshll.u32 %v2569_v41, %v2053_v9 }
 0x245   : > { %v1725_v16 = vsel %vm1718_vm4, %v1721_v45, %v1724_v48  ;;  %v2020_v62 = vsel %vm1937_vm3, %v2019_v59, %v2018_v51  ;;  %v2069_v34 = vshrl.u32 %v4037_v49, %v2054_v32  ;;  %v2024_v52 = vsel %vm3888_vm6, 0, %v2022_v39 }
 0x246   : > { %v1726_v12 = vsel %vm1715_vm2, nan, %v1725_v16  ;;  %v2023_v54 = vsel %vm3888_vm6, %v3656_v37, %v2020_v62  ;;  %v1894_v2 = vshll.u32 %v3918_v29, 30  ;;  %v2064_v19 = vor.u32 %v2063_v28, %v2062_v63 }
 0x247   : > { %2154 = vst [vmem:[%s3073_s29 + $0x58] sm:$0xff] %v1726_v12  ;;  %2488 = vcosq.f32 %v2023_v54  ;;  %v2067_v33 = vor.u32 %v2066_v57, %v2065_v46  ;;  %v2070_v50 = vor.u32 %v2069_v34, %v2068_v25  ;;  %vm2071_vm10 = vcmp.lt.s32.totalorder %v2052_v26, 1 }
 0x248   : > { %2490 = vsinq.f32 %v2023_v54  ;;  %v1895_v36 = vsub.s32 %v1891_v5, %v1894_v2  ;;  %v2028_v58 = vadd.s32 3, %v2024_v52  ;;  %vm2074_vm9 = vcmp.lt.s32.totalorder %v2052_v26, 4 }
 0x249   : > { %v2079_v31 = vsel %vm2071_vm10, %v2058_v55, %v2061_v60  ;;  %v2087_v24 = vshll.u32 %v2047_v10, 8  ;;  %vm2072_vm11 = vcmp.lt.s32.totalorder %v2052_v26, 2  ;;  %vm2073_vm12 = vcmp.lt.s32.totalorder %v2052_v26, 3 }
 0x24a   : > { %v1897_v41 = vsub.s32 0, %v1895_v36  ;;  %v2080_v49 = vsel %vm2074_vm9, %v2067_v33, 920167782  ;;  %v2076_v42 = vsel %vm2074_vm9, %v2064_v19, 2102212464  ;;  %v2083_v40 = vsel %vm2071_vm10, %v2061_v60, %v2064_v19 }
 0x24b   : > { %v2081_v15 = vsel %vm2073_vm12, %v2064_v19, %v2080_v49  ;;  %v2084_v20 = vsel %vm2074_vm9, %v2070_v50, 1326507024  ;;  %v2055_v43 = vshrl.u32 %v2565_v22, %v2054_v32  ;;  %v2077_v53 = vsel %vm2073_vm12, %v2061_v60, %v2076_v42 }
 0x24c   : > { %v2300_v47 = vmin.u32 %v1897_v41, %v1895_v36  ;;  %v2082_v4 = vsel %vm2072_vm11, %v2079_v31, %v2081_v15  ;;  %v2085_v0 = vsel %vm2073_vm12, %v2067_v33, %v2084_v20  ;;  %v2029_v1 = vand.u32 3, %v2028_v58 }
 0x24d   : > { %v2086_v9 = vsel %vm2072_vm11, %v2083_v40, %v2085_v0  ;;  %v3936_v13 = vmul.u32.u64.low %v2087_v24, %v2082_v4  ;;  %v3937_v6 = vmul.u32.u64.high %v2087_v24, %v2082_v4, %v3936_v13  ;;  %v2075_v27 = vsel %vm2071_vm10, %v2055_v43, %v2058_v55 }
 0x24e   : > { %v1899_v10 = vclz %v2300_v47  ;;  %v3940_v30 = vmul.u32.u64.low %v2087_v24, %v2086_v9  ;;  %v3941_v21 = vmul.u32.u64.high %v2087_v24, %v2086_v9, %v3940_v30  ;;  %v2078_v56 = vsel %vm2072_vm11, %v2075_v27, %v2077_v53 }
 0x24f   : > { %v2097_v22 = vadd.s32 1, %v3937_v6  ;;  %vm2031_vm14 = vcmp.eq.s32.totalorder %v2029_v1, 0  ;;  %v1887_v18 = vadd.s32 %v3873_v61, %v3879_v14  ;;  %v2094_v3 = vmul.u32 %v2087_v24, %v2078_v56 }
 0x250   : > { %v2301_v39 = vadd.s32 4294967294, %v1899_v10  ;;  %vm2096_vm15 = vc.u32 %v3941_v21, %v3936_v13  ;;  %vm2034_vm0 = vcmp.eq.s32.totalorder %v2029_v1, 2  ;;  %vm2027_vm1 = vweird.f32 %v3656_v37 }
 0x251   : > { %v2098_v45 = vsel %vm2096_vm15, %v2097_v22, %v3937_v6  ;;  %vm2030_vm2 = vcmp.lt.s32.totalorder %v2029_v1, 2  ;;  %vm1833_vm3 = vcmp.lt.s32.totalorder %v3783_v38, 0  ;;  %v1917_v37 = vsub.s32 4, %v3918_v29 }
 0x252   : > { %vm2302_vm13 = vcmp.lt.s32.totalorder %v2301_v39, 0  ;;  %v2099_v16 = vadd.s32 %v2098_v45, %v2094_v3  ;;  %vm1832_vm4 = vcmp.le.f32.partialorder %v1831_v8, 0.7853982  ;;  %v2095_v42 = vadd.s32 %v3936_v13, %v3941_v21 }
 0x253   : > { %v1902_v51 = vsel %vm2302_vm13, 0, %v2301_v39  ;;  %v1918_v31 = vsel %vm1833_vm3, %v1917_v37, %v3918_v29  ;;  %vm1923_vm10 = vweird.f32 %v3783_v38  ;;  %vm2041_vm9 = vcmp.lt.s32.totalorder %v3826_v23, 0 }
 0x254   : > { %v2489_v32 = vpop.eup %2488  ;;  %v1903_v48 = vsub.s32 32, %v1902_v51  ;;  %v1907_v44 = vsub.s32 4294967266, %v1902_v51  ;;  %v1904_v26 = vshll.u32 %v1895_v36, %v1902_v51  ;;  %v2100_v28 = vadd.s32 536870912, %v2099_v16 }
 0x255   : > { %v2491_v5 = vpop.eup %2490  ;;  %v2035_v35 = vxor.u32 2147483648, %v2489_v32  ;;  %v1920_v41 = vsel %vm1832_vm4, 0, %v1918_v31  ;;  %vm2040_vm11 = vcmp.le.f32.partialorder %v2039_v7, 0.7853982  ;;  %vm2131_vm15 = vweird.f32 %v3826_v23 }
 0x256   : > { %v2032_v11 = vxor.u32 2147483648, %v2491_v5  ;;  %v1905_v17 = vshrl.u32 %v1887_v18, %v1903_v48  ;;  %v1908_v63 = vadd.s32 127, %v1907_v44  ;;  %v2101_v46 = vshrl.u32 %v2100_v28, 30 }
 0x257   : > { %v2036_v59 = vsel %vm2034_vm0, %v2035_v35, %v2491_v5  ;;  %v1924_v20 = vadd.s32 3, %v1920_v41 }
 0x258   : > { %v2033_v61 = vsel %vm2031_vm14, %v2489_v32, %v2032_v11  ;;  %v1906_v55 = vor.u32 %v1905_v17, %v1904_v26  ;;  %v1909_v60 = vshll.u32 %v1908_v63, 23  ;;  %v2102_v25 = vshll.u32 %v2101_v46, 30 }
 0x259   : > { %v2037_v14 = vsel %vm2030_vm2, %v2033_v61, %v2036_v59  ;;  %v1925_v9 = vand.u32 3, %v1924_v20  ;;  %v2125_v18 = vsub.s32 4, %v2101_v46 }
 0x25a   : > { %v2038_v12 = vsel %vm2027_vm1, nan, %v2037_v14  ;;  %v1910_v62 = vor.u32 4788187, %v1909_v60  ;;  %v1913_v57 = vcvt.s32.f32 %v1906_v55  ;;  %v2103_v52 = vsub.s32 %v2099_v16, %v2102_v25 }
 0x25b   : > { %2157 = vst [vmem:[%s3073_s29 + $0x70] sm:$0xff] %v2038_v12  ;;  %vm1930_vm6 = vcmp.eq.s32.totalorder %v1925_v9, 2  ;;  %vm1927_vm7 = vcmp.eq.s32.totalorder %v1925_v9, 0  ;;  %vm1926_vm8 = vcmp.lt.s32.totalorder %v1925_v9, 2  ;;  %v2126_v35 = vsel %vm2041_vm9, %v2125_v18, %v2101_v46 }
 0x25c   : > { %v1911_v54 = vand.u32 2147483647, %v1910_v62  ;;  %v2105_v19 = vsub.s32 0, %v2103_v52  ;;  %v2128_v48 = vsel %vm2040_vm11, 0, %v2126_v35 }
 0x25e   : > { %v1914_v34 = vmul.f32 %v1913_v57, %v1911_v54  ;;  %v2308_v50 = vmin.u32 %v2105_v19, %v2103_v52 }
 0x260   : > { %v1915_v2 = vxor.u32 2147483648, %v1914_v34  ;;  %v2107_v58 = vclz %v2308_v50 }
 0x262   : > { %v1916_v33 = vsel %vm1833_vm3, %v1915_v2, %v1914_v34  ;;  %v2309_v24 = vadd.s32 4294967294, %v2107_v58 }
 0x263   : > { %v1919_v36 = vsel %vm1832_vm4, %v3783_v38, %v1916_v33  ;;  %v2132_v38 = vadd.s32 3, %v2128_v48 }
 0x264   : > { %2492 = vcosq.f32 %v1919_v36  ;;  %vm2310_vm5 = vcmp.lt.s32.totalorder %v2309_v24, 0 }
 0x265   : > { %2494 = vsinq.f32 %v1919_v36  ;;  %v2110_v49 = vsel %vm2310_vm5, 0, %v2309_v24  ;;  %v2133_v44 = vand.u32 3, %v2132_v38 }
 0x266   : > { %v2111_v15 = vsub.s32 32, %v2110_v49  ;;  %v2115_v40 = vsub.s32 4294967266, %v2110_v49  ;;  %v2112_v47 = vshll.u32 %v2103_v52, %v2110_v49 }
 0x267   : > { %vm2138_vm12 = vcmp.eq.s32.totalorder %v2133_v44, 2  ;;  %vm2135_vm13 = vcmp.eq.s32.totalorder %v2133_v44, 0  ;;  %vm2134_vm14 = vcmp.lt.s32.totalorder %v2133_v44, 2 }
 0x268   : > { %v2113_v8 = vshrl.u32 %v2095_v42, %v2111_v15  ;;  %v2116_v43 = vadd.s32 127, %v2115_v40 }
 0x26a   : > { %v2114_v4 = vor.u32 %v2113_v8, %v2112_v47  ;;  %v2117_v0 = vshll.u32 %v2116_v43, 23 }
 0x26c   : > { %v2118_v6 = vor.u32 4788187, %v2117_v0  ;;  %v2121_v1 = vcvt.s32.f32 %v2114_v4 }
 0x26e   : > { %v2119_v53 = vand.u32 2147483647, %v2118_v6 }
 0x270   : > { %v2122_v21 = vmul.f32 %v2121_v1, %v2119_v53 }
 0x271   : > { %v2493_v10 = vpop.eup %2492 }
 0x272   : > { %v2495_v27 = vpop.eup %2494  ;;  %v1931_v29 = vxor.u32 2147483648, %v2493_v10  ;;  %v2123_v22 = vxor.u32 2147483648, %v2122_v21 }
 0x273   : > { %v1928_v30 = vxor.u32 2147483648, %v2495_v27 }
 0x274   : > { %v1932_v13 = vsel %vm1930_vm6, %v1931_v29, %v2495_v27  ;;  %v2124_v51 = vsel %vm2041_vm9, %v2123_v22, %v2122_v21 }
 0x275   : > { %v1929_v39 = vsel %vm1927_vm7, %v2493_v10, %v1928_v30  ;;  %v2127_v5 = vsel %vm2040_vm11, %v3826_v23, %v2124_v51 }
 0x276   : > { %v1933_v56 = vsel %vm1926_vm8, %v1929_v39, %v1932_v13  ;;  %2496 = vcosq.f32 %v2127_v5 }
 0x277   : > { %v1934_v32 = vsel %vm1923_vm10, nan, %v1933_v56  ;;  %2498 = vsinq.f32 %v2127_v5 }
 0x278   : > { %2156 = vst [vmem:[%s3073_s29 + $0x68] sm:$0xff] %v1934_v32 }
 0x283   : > { %v2497_v3 = vpop.eup %2496 }
 0x284   : > { %v2499_v11 = vpop.eup %2498  ;;  %v2139_v26 = vxor.u32 2147483648, %v2497_v3 }
 0x285   : > { %v2136_v45 = vxor.u32 2147483648, %v2499_v11 }
 0x286   : > { %v2140_v7 = vsel %vm2138_vm12, %v2139_v26, %v2499_v11 }
 0x287   : > { %v2137_v59 = vsel %vm2135_vm13, %v2497_v3, %v2136_v45 }
 0x288   : > { %v2141_v17 = vsel %vm2134_vm14, %v2137_v59, %v2140_v7 }
 0x289   : > { %v2142_v63 = vsel %vm2131_vm15, nan, %v2141_v17 }
 0x28a   : > { %2158 = vst [vmem:[%s3073_s29 + $0x78] sm:$0xff] %v2142_v63 }
 0x28b   : > { %2513 = shalt.err (!%p2510_p3)
}
 0x28c   : > { %s2514_s17 = scalar_lea.hbm %s3970_s7, 2048  ;;  %s2518_s24 = scalar_lea.hbm %s4021_s3, 4096 }
 0x28d   : > { %p2515_p4 = scmp.ne.s32.totalorder %s3970_s7, %s2514_s17  ;;  %p2519_p9 = scmp.lt.s32.totalorder %s3970_s7, %s4021_s3 }
 0x28e   : > { %p2520_p10 = scmp.lt.s32.totalorder %s2518_s24, %s2514_s17 }
 0x28f   : > { %p2516_p7 = pnand %p2515_p4, %p2633_p5 }
 0x290   : > { %p2521_p11 = por %p2520_p10, %p2519_p9 }
 0x291   : > { %p2517_p8 = pneg %p2516_p7 }
 0x293   : > { %p2522_p12 = pnand %p2521_p11, %p2517_p8 }
 0x295   : > { %2525 = shalt.err (!%p2522_p12)
}
 0x296   : > { %s2572_s27 = smov 128   ;;  %s2573_s28 = smov 256  }
 0x297   : > { %s2574_s29 = smov 8  }
 0x298   : > { %2379 = dma.vmem_to_hbm [thread:$0]  (%p2633_p5), %s3972_s4, 2048, %s3970_s7, %s3978_s16, %s2572_s27, %s2573_s28, %s2574_s29  }
 0x299 PF: > { %p2385_p13 = scmp.ge.s32.totalorder %s2560_s15, 2  ;;  %s2187_s30 = sand.u32 1, %s2548_s12  }
 0x29a   : > { %s2188_s5 = scalar_lea.sflag [#allocation3], %s2187_s30 }
 0x29b   : > { %p2382_p0 = pnand %p2385_p13, %p2637_p6 }
 0x29d   : > { %p2383_p1 = pneg %p2382_p0 }
 0x29f   : > { %2543 = dma.done.wait (%p2383_p1), %s2188_s5, 2048  }
 0x2a0   : > { %2545 = vsyncadd (%p2383_p1), %s2188_s5, 4294965248  ;;  %p13_p2 = scmp.ge.s32.totalorder %s2620_s18, 4   ;;  %s4063_s12 = smov %s2552_s13 }
 0x2a1   : > { %s4064_s13 = smov %s2556_s14  ;;  %s4065_s14 = smov %s2631_s21 }
 0x2a2   : > { %s4066_s15 = smov %s2620_s18  ;;  %15 = sbr.rel (!%p13_p2) target bundleno = 3 (0x3), region = 70 }
 0x2a7   :  { %2193 = vsyncpa [#allocation3], 1 }
 0x2a8   :  { %2195 = vsyncpa [#allocation3 + $0x1], 1 }

</bundles_post_ra>
